<compile_context>
chip_gen: v6e
topology: v6e:2x2x1
jax: 0.10.0
libtpu: 0.0.40
codegen_flags: <defaults>
</compile_context>

<pallas_src>
import numpy as np
import jax
import jax.numpy as jnp
from jax import lax
from jax.experimental import pallas as pl
from jax.experimental.pallas import tpu as pltpu

_WEIGHTS_FULL = (1.0, 0.5, 0.25, 0.125, 0.125)


def _pool_matrices(h_rows, h_cols, w_rows, w_cols):
    """pht: (h_rows, h_cols) with pht[p, 2p] = pht[p, 2p+1] = 0.5 (row pooling,
    applied from the left).  pw: (w_rows, w_cols) with pw[2q, q] = pw[2q+1, q]
    = 0.5 (column pooling, applied from the right).  Entries outside the valid
    pooling pattern are exactly zero, so any top-left corner is the exact
    pooling matrix for a smaller size and zero-padded data stays exactly 0."""
    pht = np.zeros((h_rows, h_cols), np.float32)
    for p in range(h_rows):
        if 2 * p + 1 < h_cols:
            pht[p, 2 * p] = 0.5
            pht[p, 2 * p + 1] = 0.5
    pw = np.zeros((w_rows, w_cols), np.float32)
    for q in range(w_cols):
        if 2 * q + 1 < w_rows:
            pw[2 * q, q] = 0.5
            pw[2 * q + 1, q] = 0.5
    return pht, pw


def _largest_divisor_leq(n, cap):
    cap = int(max(1, min(cap, n)))
    for d in range(cap, 0, -1):
        if n % d == 0:
            return d
    return 1


def _make_kernel(num_scales, tn, hh, ww, rdim, cdim, coefs, unroll):
    """coefs[i] = weights[i] / (N * h_i * w_i); rdim/cdim are the zero-padded
    (floored at 8) compute sizes of the pooled difference at each scale."""
    H, W = hh[0], ww[0]
    H2 = H // 2

    def kernel(pht_ref, pw_ref, fake_ref, target_ref, out_ref, df_ref):
        # ---- scale 0: full-resolution term, once for the whole block --------
        df = fake_ref[...].astype(jnp.float32) - target_ref[...].astype(jnp.float32)
        df_ref[...] = df
        total = jnp.float32(coefs[0]) * jnp.sum(jnp.abs(df))

        # ---- pooled scales: per-plane loop (unrolled) ------------------------
        # Pool-matrix slices are loaded once per grid step, not per plane.
        pw1 = pw_ref[:W, :cdim[1]]
        deep = [(pht_ref[:rdim[i], :rdim[i - 1]],
                 pw_ref[:cdim[i - 1], :cdim[i]]) for i in range(2, num_scales)]

        def plane_body(n, acc):
            # scale 0 -> 1 row pool: exact strided sublane adds (no MXU work).
            ev = df_ref[n, pl.ds(0, H2, stride=2), :]
            od = df_ref[n, pl.ds(1, H2, stride=2), :]
            d = 0.5 * (ev + od)                                   # (H2, W)
            # lane-direction pool on the MXU (0/0.5 matrix -> exact in f32).
            d = jnp.dot(d, pw1, preferred_element_type=jnp.float32)
            part = jnp.float32(coefs[1]) * jnp.sum(jnp.abs(d))
            for i in range(2, num_scales):
                a, pwi = deep[i - 2]
                d = jnp.dot(a, d, preferred_element_type=jnp.float32)
                d = jnp.dot(d, pwi, preferred_element_type=jnp.float32)
                part = part + jnp.float32(coefs[i]) * jnp.sum(jnp.abs(d))
            return acc + part

        total = total + lax.fori_loop(0, tn, plane_body,
                                      jnp.zeros((), jnp.float32),
                                      unroll=unroll)
        out_ref[...] = jnp.broadcast_to(total, (1, 8, 128))

    return kernel


def multiscale_pixel_loss(fake, target, scale=5, planes_per_step=None):
    """Pallas-TPU forward of MultiscalePixelLoss (mask=None path)."""
    # TODO(synk): the optional `mask` argument of the PyTorch forward is not implemented.
    B, C, H, W = fake.shape
    assert target.shape == fake.shape
    weights = _WEIGHTS_FULL[:scale]
    S = len(weights)
    assert S >= 2, "use scale >= 2"
    div = 2 ** (S - 1)
    assert H % div == 0 and W % div == 0, \
        "H and W must be divisible by 2**(scale-1)"

    N = B * C
    fake3 = fake.reshape(N, H, W)        # native dtype; cast happens in-kernel
    target3 = target.reshape(N, H, W)

    # Per-scale true sizes, padded compute sizes (floored at 8, padding is
    # exactly zero) and folded per-scale constants.
    hh = [H >> i for i in range(S)]
    ww = [W >> i for i in range(S)]
    rdim = [H, H // 2] + [max(hh[i], 8) for i in range(2, S)]
    cdim = [W] + [max(ww[i], 8) for i in range(1, S)]
    coefs = [weights[i] / float(N * hh[i] * ww[i]) for i in range(S)]

    pht_np, pw_np = _pool_matrices(max(H // 4, 8), max(H // 2, 8),
                                   max(W, 8), max(W // 2, 8))
    pht = jnp.asarray(pht_np)            # small: only needed for scales >= 2
    pw = jnp.asarray(pw_np)              # (W, W//2) lane-direction pool

    # ---- VMEM budget / tile-size selection ----------------------------------
    itemsize = jnp.dtype(fake3.dtype).itemsize
    per_plane = (2 * 2 * H * W * itemsize        # fake+target, double-buffered
                 + H * W * 4                     # f32 difference scratch
                 + 2 * H * W * 4)                # in-kernel f32 temporaries
    fixed = (2 * int(pht.size + pw.size) * 4     # double-buffered pool matrices
             + 2 * 8 * 128 * 4                   # output block
             + 2 * 1024 * 1024)                  # slack
    try:
        kind = jax.devices()[0].device_kind.lower()
    except Exception:
        kind = ""
    is_v7 = ("v7" in kind) or ("7x" in kind)
    resident_budget = (22 if is_v7 else 40) * 1024 * 1024
    cap = max(1, (resident_budget - fixed) // per_plane)
    if planes_per_step is not None:
        cap = min(cap, planes_per_step)
    if N >= 2:
        cap = min(cap, N // 2)           # G >= 2 so both v7x TensorCores work
    TN = _largest_divisor_leq(N, cap)    # TN | N -> no input padding needed
    G = N // TN

    vmem_limit = fixed + TN * per_plane + 8 * 1024 * 1024
    vmem_limit = int(min(vmem_limit, (56 if is_v7 else 110) * 1024 * 1024))
    vmem_limit = int(max(vmem_limit, 32 * 1024 * 1024))

    unroll = _largest_divisor_leq(TN, 8)
    if unroll == TN:
        unroll = True

    kernel = _make_kernel(S, TN, hh, ww, rdim, cdim, coefs, unroll)
    partials = pl.pallas_call(
        kernel,
        out_shape=jax.ShapeDtypeStruct((G, 8, 128), jnp.float32),
        grid=(G,),
        in_specs=[
            pl.BlockSpec(tuple(pht.shape), lambda g: (0, 0)),
            pl.BlockSpec(tuple(pw.shape), lambda g: (0, 0)),
            pl.BlockSpec((TN, H, W), lambda g: (g, 0, 0)),
            pl.BlockSpec((TN, H, W), lambda g: (g, 0, 0)),
        ],
        out_specs=pl.BlockSpec((1, 8, 128), lambda g: (g, 0, 0)),
        scratch_shapes=[pltpu.VMEM((TN, H, W), jnp.float32)],
        compiler_params=pltpu.CompilerParams(
            dimension_semantics=("parallel",),
            vmem_limit_bytes=vmem_limit),
    )(pht, pw, fake3, target3)
    return jnp.sum(partials[:, 0, 0])


# ---------------- pure-JAX reference (mirrors the PyTorch module) --------------
def _avgpool2(x):
    B, C, H, W = x.shape
    return x.reshape(B, C, H // 2, 2, W // 2, 2).mean(axis=(3, 5))


def reference_loss(fake, target, scale=5):
    weights = _WEIGHTS_FULL[:scale]
    loss = jnp.float32(0.0)
    f, t = fake.astype(jnp.float32), target.astype(jnp.float32)
    for i, w in enumerate(weights):
        loss = loss + jnp.float32(w) * jnp.mean(jnp.abs(f - t))
        if i != len(weights) - 1:
            f = _avgpool2(f)
            t = _avgpool2(t)
    return loss


if __name__ == "__main__":
    key = jax.random.PRNGKey(0)
    k1, k2 = jax.random.split(key)
    B, C, H, W = 2, 4, 16, 16
    fake = jax.random.normal(k1, (B, C, H, W), dtype=jnp.float32)
    target = jax.random.normal(k2, (B, C, H, W), dtype=jnp.float32)

    loss = multiscale_pixel_loss(fake, target, scale=5)
    loss = jax.block_until_ready(loss)

    ref = jax.block_until_ready(reference_loss(fake, target, scale=5))
    if not np.allclose(np.asarray(loss), np.asarray(ref), rtol=1e-4, atol=1e-5):
        raise AssertionError(f"mismatch: kernel={float(loss)} ref={float(ref)}")
    print("KERNEL_OK")
</pallas_src>

<mosaic_0001>
module attributes {stable_mosaic.version = 11 : i64} {
  func.func @kernel(%arg0: i32, %arg1: memref<8x8xf32, #tpu.memory_space<vmem>>, %arg2: memref<16x8xf32, #tpu.memory_space<vmem>>, %arg3: memref<4x16x16xf32, #tpu.memory_space<vmem>>, %arg4: memref<4x16x16xf32, #tpu.memory_space<vmem>>, %arg5: memref<1x8x128xf32, #tpu.memory_space<vmem>>, %arg6: memref<4x16x16xf32, #tpu.memory_space<vmem>>) attributes {dimension_semantics = [#tpu.dimension_semantics<parallel>], iteration_bounds = array<i64: 2>, scalar_prefetch = 0 : i64, scratch_operands = 1 : i64, tpu.core_type = #tpu.core_type<tc>, window_params = [{pipeline_mode = #tpu.pipeline_mode<synchronous>, transform_indices = @transform_0, window_bounds = array<i64: 8, 8>}, {pipeline_mode = #tpu.pipeline_mode<synchronous>, transform_indices = @transform_1, window_bounds = array<i64: 16, 8>}, {transform_indices = @transform_2, window_bounds = array<i64: 4, 16, 16>}, {transform_indices = @transform_3, window_bounds = array<i64: 4, 16, 16>}, {transform_indices = @transform_4, window_bounds = array<i64: 1, 8, 128>}]} {
    %c0 = arith.constant 0 : index
    %c0_0 = arith.constant 0 : index
    %c0_1 = arith.constant 0 : index
    %0 = vector.load %arg3[%c0, %c0_0, %c0_1] : memref<4x16x16xf32, #tpu.memory_space<vmem>>, vector<4x16x16xf32>
    %c0_2 = arith.constant 0 : index
    %c0_3 = arith.constant 0 : index
    %c0_4 = arith.constant 0 : index
    %1 = vector.load %arg4[%c0_2, %c0_3, %c0_4] : memref<4x16x16xf32, #tpu.memory_space<vmem>>, vector<4x16x16xf32>
    %2 = arith.subf %0, %1 : vector<4x16x16xf32>
    %c0_5 = arith.constant 0 : index
    %c0_6 = arith.constant 0 : index
    %c0_7 = arith.constant 0 : index
    %3 = vector.load %arg6[%c0_5, %c0_6, %c0_7] : memref<4x16x16xf32, #tpu.memory_space<vmem>>, vector<4x16x16xf32>
    tpu.vector_store %arg6[%c0_5, %c0_6, %c0_7], %2 {strides = array<i32>} : memref<4x16x16xf32, #tpu.memory_space<vmem>>, vector<4x16x16xf32>,
    %4 = math.absf %2 : vector<4x16x16xf32>
    %5 = vector.shape_cast %4 : vector<4x16x16xf32> to vector<1x4x16x16xf32>
    %cst = arith.constant dense<0.000000e+00> : vector<1xf32>
    %6 = vector.multi_reduction <add>, %5, %cst [1, 2, 3] : vector<1x4x16x16xf32> to vector<1xf32>
    %7 = vector.shape_cast %6 : vector<1xf32> to vector<1x1x1x1xf32>
    %8 = vector.extract %7[0, 0, 0, 0] : f32 from vector<1x1x1x1xf32>
    %cst_8 = arith.constant 4.8828125E-4 : f32
    %9 = arith.mulf %cst_8, %8 : f32
    %c0_9 = arith.constant 0 : index
    %c0_10 = arith.constant 0 : index
    %10 = vector.load %arg2[%c0_9, %c0_10] : memref<16x8xf32, #tpu.memory_space<vmem>>, vector<16x8xf32>
    %c0_11 = arith.constant 0 : index
    %c0_12 = arith.constant 0 : index
    %11 = vector.load %arg1[%c0_11, %c0_12] : memref<8x8xf32, #tpu.memory_space<vmem>>, vector<8x8xf32>
    %c0_13 = arith.constant 0 : index
    %c0_14 = arith.constant 0 : index
    %12 = vector.load %arg2[%c0_13, %c0_14] : memref<16x8xf32, #tpu.memory_space<vmem>>, vector<8x8xf32>
    %c0_15 = arith.constant 0 : index
    %c0_16 = arith.constant 0 : index
    %13 = vector.load %arg1[%c0_15, %c0_16] : memref<8x8xf32, #tpu.memory_space<vmem>>, vector<8x8xf32>
    %c0_17 = arith.constant 0 : index
    %c0_18 = arith.constant 0 : index
    %14 = vector.load %arg2[%c0_17, %c0_18] : memref<16x8xf32, #tpu.memory_space<vmem>>, vector<8x8xf32>
    %c0_19 = arith.constant 0 : index
    %c0_20 = arith.constant 0 : index
    %15 = vector.load %arg1[%c0_19, %c0_20] : memref<8x8xf32, #tpu.memory_space<vmem>>, vector<8x8xf32>
    %c0_21 = arith.constant 0 : index
    %c0_22 = arith.constant 0 : index
    %16 = vector.load %arg2[%c0_21, %c0_22] : memref<16x8xf32, #tpu.memory_space<vmem>>, vector<8x8xf32>
    %cst_23 = arith.constant 0.000000e+00 : f32
    %c0_i32 = arith.constant 0 : i32
    %17 = arith.index_cast %c0_i32 : i32 to index
    %c0_24 = arith.constant 0 : index
    %c0_25 = arith.constant 0 : index
    %18 = tpu.strided_load %arg6[%17, %c0_24, %c0_25] {strides = array<i32: 1, 2, 1>} : memref<4x16x16xf32, #tpu.memory_space<vmem>>, vector<1x8x16xf32>
    %19 = vector.shape_cast %18 : vector<1x8x16xf32> to vector<8x16xf32>
    %20 = arith.index_cast %c0_i32 : i32 to index
    %c1 = arith.constant 1 : index
    %c0_26 = arith.constant 0 : index
    %21 = tpu.strided_load %arg6[%20, %c1, %c0_26] {strides = array<i32: 1, 2, 1>} : memref<4x16x16xf32, #tpu.memory_space<vmem>>, vector<1x8x16xf32>
    %22 = vector.shape_cast %21 : vector<1x8x16xf32> to vector<8x16xf32>
    %23 = arith.addf %19, %22 : vector<8x16xf32>
    %cst_27 = arith.constant 5.000000e-01 : f32
    %24 = vector.broadcast %cst_27 : f32 to vector<8x16xf32>
    %25 = arith.mulf %24, %23 : vector<8x16xf32>
    %cst_28 = arith.constant dense<0.000000e+00> : vector<8x8xf32>
    %26 = tpu.matmul %25, %10, %cst_28 {dimension_numbers = #tpu.dot_dimension_numbers<[1], [0], [0], [1], [0, 0, 1, 1], [], []>} : vector<8x16xf32>, vector<16x8xf32>, vector<8x8xf32> -> vector<8x8xf32>
    %27 = math.absf %26 : vector<8x8xf32>
    %28 = vector.shape_cast %27 : vector<8x8xf32> to vector<1x8x8xf32>
    %cst_29 = arith.constant dense<0.000000e+00> : vector<1xf32>
    %29 = vector.multi_reduction <add>, %28, %cst_29 [1, 2] : vector<1x8x8xf32> to vector<1xf32>
    %30 = vector.shape_cast %29 : vector<1xf32> to vector<1x1x1xf32>
    %31 = vector.extract %30[0, 0, 0] : f32 from vector<1x1x1xf32>
    %cst_30 = arith.constant 9.765625E-4 : f32
    %32 = arith.mulf %cst_30, %31 : f32
    %cst_31 = arith.constant dense<0.000000e+00> : vector<8x8xf32>
    %33 = tpu.matmul %11, %26, %cst_31 {dimension_numbers = #tpu.dot_dimension_numbers<[1], [0], [0], [1], [0, 0, 1, 1], [], []>} : vector<8x8xf32>, vector<8x8xf32>, vector<8x8xf32> -> vector<8x8xf32>
    %cst_32 = arith.constant dense<0.000000e+00> : vector<8x8xf32>
    %34 = tpu.matmul %33, %12, %cst_32 {dimension_numbers = #tpu.dot_dimension_numbers<[1], [0], [0], [1], [0, 0, 1, 1], [], []>} : vector<8x8xf32>, vector<8x8xf32>, vector<8x8xf32> -> vector<8x8xf32>
    %35 = math.absf %34 : vector<8x8xf32>
    %36 = vector.shape_cast %35 : vector<8x8xf32> to vector<1x8x8xf32>
    %cst_33 = arith.constant dense<0.000000e+00> : vector<1xf32>
    %37 = vector.multi_reduction <add>, %36, %cst_33 [1, 2] : vector<1x8x8xf32> to vector<1xf32>
    %38 = vector.shape_cast %37 : vector<1xf32> to vector<1x1x1xf32>
    %39 = vector.extract %38[0, 0, 0] : f32 from vector<1x1x1xf32>
    %cst_34 = arith.constant 0.001953125 : f32
    %40 = arith.mulf %cst_34, %39 : f32
    %41 = arith.addf %32, %40 : f32
    %cst_35 = arith.constant dense<0.000000e+00> : vector<8x8xf32>
    %42 = tpu.matmul %13, %34, %cst_35 {dimension_numbers = #tpu.dot_dimension_numbers<[1], [0], [0], [1], [0, 0, 1, 1], [], []>} : vector<8x8xf32>, vector<8x8xf32>, vector<8x8xf32> -> vector<8x8xf32>
    %cst_36 = arith.constant dense<0.000000e+00> : vector<8x8xf32>
    %43 = tpu.matmul %42, %14, %cst_36 {dimension_numbers = #tpu.dot_dimension_numbers<[1], [0], [0], [1], [0, 0, 1, 1], [], []>} : vector<8x8xf32>, vector<8x8xf32>, vector<8x8xf32> -> vector<8x8xf32>
    %44 = math.absf %43 : vector<8x8xf32>
    %45 = vector.shape_cast %44 : vector<8x8xf32> to vector<1x8x8xf32>
    %cst_37 = arith.constant dense<0.000000e+00> : vector<1xf32>
    %46 = vector.multi_reduction <add>, %45, %cst_37 [1, 2] : vector<1x8x8xf32> to vector<1xf32>
    %47 = vector.shape_cast %46 : vector<1xf32> to vector<1x1x1xf32>
    %48 = vector.extract %47[0, 0, 0] : f32 from vector<1x1x1xf32>
    %cst_38 = arith.constant 3.906250e-03 : f32
    %49 = arith.mulf %cst_38, %48 : f32
    %50 = arith.addf %41, %49 : f32
    %cst_39 = arith.constant dense<0.000000e+00> : vector<8x8xf32>
    %51 = tpu.matmul %15, %43, %cst_39 {dimension_numbers = #tpu.dot_dimension_numbers<[1], [0], [0], [1], [0, 0, 1, 1], [], []>} : vector<8x8xf32>, vector<8x8xf32>, vector<8x8xf32> -> vector<8x8xf32>
    %cst_40 = arith.constant dense<0.000000e+00> : vector<8x8xf32>
    %52 = tpu.matmul %51, %16, %cst_40 {dimension_numbers = #tpu.dot_dimension_numbers<[1], [0], [0], [1], [0, 0, 1, 1], [], []>} : vector<8x8xf32>, vector<8x8xf32>, vector<8x8xf32> -> vector<8x8xf32>
    %53 = math.absf %52 : vector<8x8xf32>
    %54 = vector.shape_cast %53 : vector<8x8xf32> to vector<1x8x8xf32>
    %cst_41 = arith.constant dense<0.000000e+00> : vector<1xf32>
    %55 = vector.multi_reduction <add>, %54, %cst_41 [1, 2] : vector<1x8x8xf32> to vector<1xf32>
    %56 = vector.shape_cast %55 : vector<1xf32> to vector<1x1x1xf32>
    %57 = vector.extract %56[0, 0, 0] : f32 from vector<1x1x1xf32>
    %cst_42 = arith.constant 1.562500e-02 : f32
    %58 = arith.mulf %cst_42, %57 : f32
    %59 = arith.addf %50, %58 : f32
    %60 = arith.addf %cst_23, %59 : f32
    %c1_i32 = arith.constant 1 : i32
    %61 = arith.index_cast %c1_i32 : i32 to index
    %c0_43 = arith.constant 0 : index
    %c0_44 = arith.constant 0 : index
    %62 = tpu.strided_load %arg6[%61, %c0_43, %c0_44] {strides = array<i32: 1, 2, 1>} : memref<4x16x16xf32, #tpu.memory_space<vmem>>, vector<1x8x16xf32>
    %63 = vector.shape_cast %62 : vector<1x8x16xf32> to vector<8x16xf32>
    %64 = arith.index_cast %c1_i32 : i32 to index
    %c1_45 = arith.constant 1 : index
    %c0_46 = arith.constant 0 : index
    %65 = tpu.strided_load %arg6[%64, %c1_45, %c0_46] {strides = array<i32: 1, 2, 1>} : memref<4x16x16xf32, #tpu.memory_space<vmem>>, vector<1x8x16xf32>
    %66 = vector.shape_cast %65 : vector<1x8x16xf32> to vector<8x16xf32>
    %67 = arith.addf %63, %66 : vector<8x16xf32>
    %cst_47 = arith.constant 5.000000e-01 : f32
    %68 = vector.broadcast %cst_47 : f32 to vector<8x16xf32>
    %69 = arith.mulf %68, %67 : vector<8x16xf32>
    %cst_48 = arith.constant dense<0.000000e+00> : vector<8x8xf32>
    %70 = tpu.matmul %69, %10, %cst_48 {dimension_numbers = #tpu.dot_dimension_numbers<[1], [0], [0], [1], [0, 0, 1, 1], [], []>} : vector<8x16xf32>, vector<16x8xf32>, vector<8x8xf32> -> vector<8x8xf32>
    %71 = math.absf %70 : vector<8x8xf32>
    %72 = vector.shape_cast %71 : vector<8x8xf32> to vector<1x8x8xf32>
    %cst_49 = arith.constant dense<0.000000e+00> : vector<1xf32>
    %73 = vector.multi_reduction <add>, %72, %cst_49 [1, 2] : vector<1x8x8xf32> to vector<1xf32>
    %74 = vector.shape_cast %73 : vector<1xf32> to vector<1x1x1xf32>
    %75 = vector.extract %74[0, 0, 0] : f32 from vector<1x1x1xf32>
    %cst_50 = arith.constant 9.765625E-4 : f32
    %76 = arith.mulf %cst_50, %75 : f32
    %cst_51 = arith.constant dense<0.000000e+00> : vector<8x8xf32>
    %77 = tpu.matmul %11, %70, %cst_51 {dimension_numbers = #tpu.dot_dimension_numbers<[1], [0], [0], [1], [0, 0, 1, 1], [], []>} : vector<8x8xf32>, vector<8x8xf32>, vector<8x8xf32> -> vector<8x8xf32>
    %cst_52 = arith.constant dense<0.000000e+00> : vector<8x8xf32>
    %78 = tpu.matmul %77, %12, %cst_52 {dimension_numbers = #tpu.dot_dimension_numbers<[1], [0], [0], [1], [0, 0, 1, 1], [], []>} : vector<8x8xf32>, vector<8x8xf32>, vector<8x8xf32> -> vector<8x8xf32>
    %79 = math.absf %78 : vector<8x8xf32>
    %80 = vector.shape_cast %79 : vector<8x8xf32> to vector<1x8x8xf32>
    %cst_53 = arith.constant dense<0.000000e+00> : vector<1xf32>
    %81 = vector.multi_reduction <add>, %80, %cst_53 [1, 2] : vector<1x8x8xf32> to vector<1xf32>
    %82 = vector.shape_cast %81 : vector<1xf32> to vector<1x1x1xf32>
    %83 = vector.extract %82[0, 0, 0] : f32 from vector<1x1x1xf32>
    %cst_54 = arith.constant 0.001953125 : f32
    %84 = arith.mulf %cst_54, %83 : f32
    %85 = arith.addf %76, %84 : f32
    %cst_55 = arith.constant dense<0.000000e+00> : vector<8x8xf32>
    %86 = tpu.matmul %13, %78, %cst_55 {dimension_numbers = #tpu.dot_dimension_numbers<[1], [0], [0], [1], [0, 0, 1, 1], [], []>} : vector<8x8xf32>, vector<8x8xf32>, vector<8x8xf32> -> vector<8x8xf32>
    %cst_56 = arith.constant dense<0.000000e+00> : vector<8x8xf32>
    %87 = tpu.matmul %86, %14, %cst_56 {dimension_numbers = #tpu.dot_dimension_numbers<[1], [0], [0], [1], [0, 0, 1, 1], [], []>} : vector<8x8xf32>, vector<8x8xf32>, vector<8x8xf32> -> vector<8x8xf32>
    %88 = math.absf %87 : vector<8x8xf32>
    %89 = vector.shape_cast %88 : vector<8x8xf32> to vector<1x8x8xf32>
    %cst_57 = arith.constant dense<0.000000e+00> : vector<1xf32>
    %90 = vector.multi_reduction <add>, %89, %cst_57 [1, 2] : vector<1x8x8xf32> to vector<1xf32>
    %91 = vector.shape_cast %90 : vector<1xf32> to vector<1x1x1xf32>
    %92 = vector.extract %91[0, 0, 0] : f32 from vector<1x1x1xf32>
    %cst_58 = arith.constant 3.906250e-03 : f32
    %93 = arith.mulf %cst_58, %92 : f32
    %94 = arith.addf %85, %93 : f32
    %cst_59 = arith.constant dense<0.000000e+00> : vector<8x8xf32>
    %95 = tpu.matmul %15, %87, %cst_59 {dimension_numbers = #tpu.dot_dimension_numbers<[1], [0], [0], [1], [0, 0, 1, 1], [], []>} : vector<8x8xf32>, vector<8x8xf32>, vector<8x8xf32> -> vector<8x8xf32>
    %cst_60 = arith.constant dense<0.000000e+00> : vector<8x8xf32>
    %96 = tpu.matmul %95, %16, %cst_60 {dimension_numbers = #tpu.dot_dimension_numbers<[1], [0], [0], [1], [0, 0, 1, 1], [], []>} : vector<8x8xf32>, vector<8x8xf32>, vector<8x8xf32> -> vector<8x8xf32>
    %97 = math.absf %96 : vector<8x8xf32>
    %98 = vector.shape_cast %97 : vector<8x8xf32> to vector<1x8x8xf32>
    %cst_61 = arith.constant dense<0.000000e+00> : vector<1xf32>
    %99 = vector.multi_reduction <add>, %98, %cst_61 [1, 2] : vector<1x8x8xf32> to vector<1xf32>
    %100 = vector.shape_cast %99 : vector<1xf32> to vector<1x1x1xf32>
    %101 = vector.extract %100[0, 0, 0] : f32 from vector<1x1x1xf32>
    %cst_62 = arith.constant 1.562500e-02 : f32
    %102 = arith.mulf %cst_62, %101 : f32
    %103 = arith.addf %94, %102 : f32
    %104 = arith.addf %60, %103 : f32
    %c2_i32 = arith.constant 2 : i32
    %105 = arith.index_cast %c2_i32 : i32 to index
    %c0_63 = arith.constant 0 : index
    %c0_64 = arith.constant 0 : index
    %106 = tpu.strided_load %arg6[%105, %c0_63, %c0_64] {strides = array<i32: 1, 2, 1>} : memref<4x16x16xf32, #tpu.memory_space<vmem>>, vector<1x8x16xf32>
    %107 = vector.shape_cast %106 : vector<1x8x16xf32> to vector<8x16xf32>
    %108 = arith.index_cast %c2_i32 : i32 to index
    %c1_65 = arith.constant 1 : index
    %c0_66 = arith.constant 0 : index
    %109 = tpu.strided_load %arg6[%108, %c1_65, %c0_66] {strides = array<i32: 1, 2, 1>} : memref<4x16x16xf32, #tpu.memory_space<vmem>>, vector<1x8x16xf32>
    %110 = vector.shape_cast %109 : vector<1x8x16xf32> to vector<8x16xf32>
    %111 = arith.addf %107, %110 : vector<8x16xf32>
    %cst_67 = arith.constant 5.000000e-01 : f32
    %112 = vector.broadcast %cst_67 : f32 to vector<8x16xf32>
    %113 = arith.mulf %112, %111 : vector<8x16xf32>
    %cst_68 = arith.constant dense<0.000000e+00> : vector<8x8xf32>
    %114 = tpu.matmul %113, %10, %cst_68 {dimension_numbers = #tpu.dot_dimension_numbers<[1], [0], [0], [1], [0, 0, 1, 1], [], []>} : vector<8x16xf32>, vector<16x8xf32>, vector<8x8xf32> -> vector<8x8xf32>
    %115 = math.absf %114 : vector<8x8xf32>
    %116 = vector.shape_cast %115 : vector<8x8xf32> to vector<1x8x8xf32>
    %cst_69 = arith.constant dense<0.000000e+00> : vector<1xf32>
    %117 = vector.multi_reduction <add>, %116, %cst_69 [1, 2] : vector<1x8x8xf32> to vector<1xf32>
    %118 = vector.shape_cast %117 : vector<1xf32> to vector<1x1x1xf32>
    %119 = vector.extract %118[0, 0, 0] : f32 from vector<1x1x1xf32>
    %cst_70 = arith.constant 9.765625E-4 : f32
    %120 = arith.mulf %cst_70, %119 : f32
    %cst_71 = arith.constant dense<0.000000e+00> : vector<8x8xf32>
    %121 = tpu.matmul %11, %114, %cst_71 {dimension_numbers = #tpu.dot_dimension_numbers<[1], [0], [0], [1], [0, 0, 1, 1], [], []>} : vector<8x8xf32>, vector<8x8xf32>, vector<8x8xf32> -> vector<8x8xf32>
    %cst_72 = arith.constant dense<0.000000e+00> : vector<8x8xf32>
    %122 = tpu.matmul %121, %12, %cst_72 {dimension_numbers = #tpu.dot_dimension_numbers<[1], [0], [0], [1], [0, 0, 1, 1], [], []>} : vector<8x8xf32>, vector<8x8xf32>, vector<8x8xf32> -> vector<8x8xf32>
    %123 = math.absf %122 : vector<8x8xf32>
    %124 = vector.shape_cast %123 : vector<8x8xf32> to vector<1x8x8xf32>
    %cst_73 = arith.constant dense<0.000000e+00> : vector<1xf32>
    %125 = vector.multi_reduction <add>, %124, %cst_73 [1, 2] : vector<1x8x8xf32> to vector<1xf32>
    %126 = vector.shape_cast %125 : vector<1xf32> to vector<1x1x1xf32>
    %127 = vector.extract %126[0, 0, 0] : f32 from vector<1x1x1xf32>
    %cst_74 = arith.constant 0.001953125 : f32
    %128 = arith.mulf %cst_74, %127 : f32
    %129 = arith.addf %120, %128 : f32
    %cst_75 = arith.constant dense<0.000000e+00> : vector<8x8xf32>
    %130 = tpu.matmul %13, %122, %cst_75 {dimension_numbers = #tpu.dot_dimension_numbers<[1], [0], [0], [1], [0, 0, 1, 1], [], []>} : vector<8x8xf32>, vector<8x8xf32>, vector<8x8xf32> -> vector<8x8xf32>
    %cst_76 = arith.constant dense<0.000000e+00> : vector<8x8xf32>
    %131 = tpu.matmul %130, %14, %cst_76 {dimension_numbers = #tpu.dot_dimension_numbers<[1], [0], [0], [1], [0, 0, 1, 1], [], []>} : vector<8x8xf32>, vector<8x8xf32>, vector<8x8xf32> -> vector<8x8xf32>
    %132 = math.absf %131 : vector<8x8xf32>
    %133 = vector.shape_cast %132 : vector<8x8xf32> to vector<1x8x8xf32>
    %cst_77 = arith.constant dense<0.000000e+00> : vector<1xf32>
    %134 = vector.multi_reduction <add>, %133, %cst_77 [1, 2] : vector<1x8x8xf32> to vector<1xf32>
    %135 = vector.shape_cast %134 : vector<1xf32> to vector<1x1x1xf32>
    %136 = vector.extract %135[0, 0, 0] : f32 from vector<1x1x1xf32>
    %cst_78 = arith.constant 3.906250e-03 : f32
    %137 = arith.mulf %cst_78, %136 : f32
    %138 = arith.addf %129, %137 : f32
    %cst_79 = arith.constant dense<0.000000e+00> : vector<8x8xf32>
    %139 = tpu.matmul %15, %131, %cst_79 {dimension_numbers = #tpu.dot_dimension_numbers<[1], [0], [0], [1], [0, 0, 1, 1], [], []>} : vector<8x8xf32>, vector<8x8xf32>, vector<8x8xf32> -> vector<8x8xf32>
    %cst_80 = arith.constant dense<0.000000e+00> : vector<8x8xf32>
    %140 = tpu.matmul %139, %16, %cst_80 {dimension_numbers = #tpu.dot_dimension_numbers<[1], [0], [0], [1], [0, 0, 1, 1], [], []>} : vector<8x8xf32>, vector<8x8xf32>, vector<8x8xf32> -> vector<8x8xf32>
    %141 = math.absf %140 : vector<8x8xf32>
    %142 = vector.shape_cast %141 : vector<8x8xf32> to vector<1x8x8xf32>
    %cst_81 = arith.constant dense<0.000000e+00> : vector<1xf32>
    %143 = vector.multi_reduction <add>, %142, %cst_81 [1, 2] : vector<1x8x8xf32> to vector<1xf32>
    %144 = vector.shape_cast %143 : vector<1xf32> to vector<1x1x1xf32>
    %145 = vector.extract %144[0, 0, 0] : f32 from vector<1x1x1xf32>
    %cst_82 = arith.constant 1.562500e-02 : f32
    %146 = arith.mulf %cst_82, %145 : f32
    %147 = arith.addf %138, %146 : f32
    %148 = arith.addf %104, %147 : f32
    %c3_i32 = arith.constant 3 : i32
    %149 = arith.index_cast %c3_i32 : i32 to index
    %c0_83 = arith.constant 0 : index
    %c0_84 = arith.constant 0 : index
    %150 = tpu.strided_load %arg6[%149, %c0_83, %c0_84] {strides = array<i32: 1, 2, 1>} : memref<4x16x16xf32, #tpu.memory_space<vmem>>, vector<1x8x16xf32>
    %151 = vector.shape_cast %150 : vector<1x8x16xf32> to vector<8x16xf32>
    %152 = arith.index_cast %c3_i32 : i32 to index
    %c1_85 = arith.constant 1 : index
    %c0_86 = arith.constant 0 : index
    %153 = tpu.strided_load %arg6[%152, %c1_85, %c0_86] {strides = array<i32: 1, 2, 1>} : memref<4x16x16xf32, #tpu.memory_space<vmem>>, vector<1x8x16xf32>
    %154 = vector.shape_cast %153 : vector<1x8x16xf32> to vector<8x16xf32>
    %155 = arith.addf %151, %154 : vector<8x16xf32>
    %cst_87 = arith.constant 5.000000e-01 : f32
    %156 = vector.broadcast %cst_87 : f32 to vector<8x16xf32>
    %157 = arith.mulf %156, %155 : vector<8x16xf32>
    %cst_88 = arith.constant dense<0.000000e+00> : vector<8x8xf32>
    %158 = tpu.matmul %157, %10, %cst_88 {dimension_numbers = #tpu.dot_dimension_numbers<[1], [0], [0], [1], [0, 0, 1, 1], [], []>} : vector<8x16xf32>, vector<16x8xf32>, vector<8x8xf32> -> vector<8x8xf32>
    %159 = math.absf %158 : vector<8x8xf32>
    %160 = vector.shape_cast %159 : vector<8x8xf32> to vector<1x8x8xf32>
    %cst_89 = arith.constant dense<0.000000e+00> : vector<1xf32>
    %161 = vector.multi_reduction <add>, %160, %cst_89 [1, 2] : vector<1x8x8xf32> to vector<1xf32>
    %162 = vector.shape_cast %161 : vector<1xf32> to vector<1x1x1xf32>
    %163 = vector.extract %162[0, 0, 0] : f32 from vector<1x1x1xf32>
    %cst_90 = arith.constant 9.765625E-4 : f32
    %164 = arith.mulf %cst_90, %163 : f32
    %cst_91 = arith.constant dense<0.000000e+00> : vector<8x8xf32>
    %165 = tpu.matmul %11, %158, %cst_91 {dimension_numbers = #tpu.dot_dimension_numbers<[1], [0], [0], [1], [0, 0, 1, 1], [], []>} : vector<8x8xf32>, vector<8x8xf32>, vector<8x8xf32> -> vector<8x8xf32>
    %cst_92 = arith.constant dense<0.000000e+00> : vector<8x8xf32>
    %166 = tpu.matmul %165, %12, %cst_92 {dimension_numbers = #tpu.dot_dimension_numbers<[1], [0], [0], [1], [0, 0, 1, 1], [], []>} : vector<8x8xf32>, vector<8x8xf32>, vector<8x8xf32> -> vector<8x8xf32>
    %167 = math.absf %166 : vector<8x8xf32>
    %168 = vector.shape_cast %167 : vector<8x8xf32> to vector<1x8x8xf32>
    %cst_93 = arith.constant dense<0.000000e+00> : vector<1xf32>
    %169 = vector.multi_reduction <add>, %168, %cst_93 [1, 2] : vector<1x8x8xf32> to vector<1xf32>
    %170 = vector.shape_cast %169 : vector<1xf32> to vector<1x1x1xf32>
    %171 = vector.extract %170[0, 0, 0] : f32 from vector<1x1x1xf32>
    %cst_94 = arith.constant 0.001953125 : f32
    %172 = arith.mulf %cst_94, %171 : f32
    %173 = arith.addf %164, %172 : f32
    %cst_95 = arith.constant dense<0.000000e+00> : vector<8x8xf32>
    %174 = tpu.matmul %13, %166, %cst_95 {dimension_numbers = #tpu.dot_dimension_numbers<[1], [0], [0], [1], [0, 0, 1, 1], [], []>} : vector<8x8xf32>, vector<8x8xf32>, vector<8x8xf32> -> vector<8x8xf32>
    %cst_96 = arith.constant dense<0.000000e+00> : vector<8x8xf32>
    %175 = tpu.matmul %174, %14, %cst_96 {dimension_numbers = #tpu.dot_dimension_numbers<[1], [0], [0], [1], [0, 0, 1, 1], [], []>} : vector<8x8xf32>, vector<8x8xf32>, vector<8x8xf32> -> vector<8x8xf32>
    %176 = math.absf %175 : vector<8x8xf32>
    %177 = vector.shape_cast %176 : vector<8x8xf32> to vector<1x8x8xf32>
    %cst_97 = arith.constant dense<0.000000e+00> : vector<1xf32>
    %178 = vector.multi_reduction <add>, %177, %cst_97 [1, 2] : vector<1x8x8xf32> to vector<1xf32>
    %179 = vector.shape_cast %178 : vector<1xf32> to vector<1x1x1xf32>
    %180 = vector.extract %179[0, 0, 0] : f32 from vector<1x1x1xf32>
    %cst_98 = arith.constant 3.906250e-03 : f32
    %181 = arith.mulf %cst_98, %180 : f32
    %182 = arith.addf %173, %181 : f32
    %cst_99 = arith.constant dense<0.000000e+00> : vector<8x8xf32>
    %183 = tpu.matmul %15, %175, %cst_99 {dimension_numbers = #tpu.dot_dimension_numbers<[1], [0], [0], [1], [0, 0, 1, 1], [], []>} : vector<8x8xf32>, vector<8x8xf32>, vector<8x8xf32> -> vector<8x8xf32>
    %cst_100 = arith.constant dense<0.000000e+00> : vector<8x8xf32>
    %184 = tpu.matmul %183, %16, %cst_100 {dimension_numbers = #tpu.dot_dimension_numbers<[1], [0], [0], [1], [0, 0, 1, 1], [], []>} : vector<8x8xf32>, vector<8x8xf32>, vector<8x8xf32> -> vector<8x8xf32>
    %185 = math.absf %184 : vector<8x8xf32>
    %186 = vector.shape_cast %185 : vector<8x8xf32> to vector<1x8x8xf32>
    %cst_101 = arith.constant dense<0.000000e+00> : vector<1xf32>
    %187 = vector.multi_reduction <add>, %186, %cst_101 [1, 2] : vector<1x8x8xf32> to vector<1xf32>
    %188 = vector.shape_cast %187 : vector<1xf32> to vector<1x1x1xf32>
    %189 = vector.extract %188[0, 0, 0] : f32 from vector<1x1x1xf32>
    %cst_102 = arith.constant 1.562500e-02 : f32
    %190 = arith.mulf %cst_102, %189 : f32
    %191 = arith.addf %182, %190 : f32
    %192 = arith.addf %148, %191 : f32
    %c4_i32 = arith.constant 4 : i32
    %193 = arith.addf %9, %192 : f32
    %194 = vector.broadcast %193 : f32 to vector<1x8x128xf32>
    %c0_103 = arith.constant 0 : index
    %c0_104 = arith.constant 0 : index
    %c0_105 = arith.constant 0 : index
    %195 = vector.load %arg5[%c0_103, %c0_104, %c0_105] : memref<1x8x128xf32, #tpu.memory_space<vmem>>, vector<1x8x128xf32>
    tpu.vector_store %arg5[%c0_103, %c0_104, %c0_105], %194 {strides = array<i32>} : memref<1x8x128xf32, #tpu.memory_space<vmem>>, vector<1x8x128xf32>,
    return
  }
  func.func @transform_0(%arg0: i32) -> (i32, i32) {
    %c0_i32 = arith.constant 0 : i32
    %c0_i32_0 = arith.constant 0 : i32
    %c0_i32_1 = arith.constant 0 : i32
    return %c0_i32, %c0_i32_0 : i32, i32
  }
  func.func @transform_1(%arg0: i32) -> (i32, i32) {
    %c0_i32 = arith.constant 0 : i32
    %c0_i32_0 = arith.constant 0 : i32
    %c0_i32_1 = arith.constant 0 : i32
    return %c0_i32, %c0_i32_0 : i32, i32
  }
  func.func @transform_2(%arg0: i32) -> (i32, i32, i32) {
    %c0_i32 = arith.constant 0 : i32
    %c0_i32_0 = arith.constant 0 : i32
    %c0_i32_1 = arith.constant 0 : i32
    return %arg0, %c0_i32, %c0_i32_0 : i32, i32, i32
  }
  func.func @transform_3(%arg0: i32) -> (i32, i32, i32) {
    %c0_i32 = arith.constant 0 : i32
    %c0_i32_0 = arith.constant 0 : i32
    %c0_i32_1 = arith.constant 0 : i32
    return %arg0, %c0_i32, %c0_i32_0 : i32, i32, i32
  }
  func.func @transform_4(%arg0: i32) -> (i32, i32, i32) {
    %c0_i32 = arith.constant 0 : i32
    %c0_i32_0 = arith.constant 0 : i32
    %c0_i32_1 = arith.constant 0 : i32
    return %arg0, %c0_i32, %c0_i32_0 : i32, i32, i32
  }
}

</mosaic_0001>

<bundles_post_ra>
// kernel: tpu_custom_call.1
= control target key start
LH: loop header
LB: loop body
LE: loop exit
PB: predicated region body
PF: predicated region fallthrough
CT: control target
= control target key end

     0   :  { %s3613_s0 = inlined_call_operand.vmem [shape: f32[8,8], index: 0, kind: input, shape index: {}]   ;;  %s3614_s1 = inlined_call_operand.vmem [shape: f32[16,8], index: 1, kind: input, shape index: {}]   ;;  %s3615_s2 = inlined_call_operand.hbm [shape: f32[8,16,16], index: 2, kind: input, shape index: {}]   ;;  %s3616_s3 = inlined_call_operand.hbm [shape: f32[8,16,16], index: 3, kind: input, shape index: {}]   ;;  %s3617_s4 = inlined_call_operand.hbm [shape: f32[2,8,128], index: 4, kind: output, shape index: {}]  }
   0x1   :  { %3628 = sst [smem:[#allocation19_spill]] %s3613_s0 }
   0x2   :  { %3629 = sst [smem:[#allocation20_spill]] %s3614_s1 }
   0x3   :  { %3630 = sst [smem:[#allocation21_spill]] %s3615_s2 }
   0x4   :  { %3631 = sst [smem:[#allocation22_spill]] %s3616_s3 }
   0x5   :  { %3632 = sst [smem:[#allocation23_spill]] %s3617_s4 }
   0x6   :  { %9 = vsyncpa [#allocation4], 0 }
   0x7   :  { %11 = vsyncpa [#allocation4 + $0x1], 0 }
   0x8   :  { %12 = vsyncpa [#allocation7], 0 }
   0x9   :  { %14 = vsyncpa [#allocation7 + $0x1], 0 }
   0xa   :  { %15 = vsyncpa [#allocation5], 0 }
   0xb   :  { %17 = vsyncpa [#allocation5 + $0x1], 0  ;;  %s3191_s15 = smov 0   ;;  %s3193_s16 = smov 0  }
   0xc   :  { %s3195_s17 = smov 0   ;;  %s3197_s18 = smov 0  }
   0xd LB: > { %3633 = sst [smem:[#allocation12_spill]] %s3145_s15  ;;  %s3212_s19 = sadd.s32 4294967295, %s3157_s18   ;;  %s3157_s18 = sphi %s3197_s18, %s3659_s18   ;;  %s3153_s17 = sphi %s3195_s17, %s3662_s17   ;;  %s3149_s16 = sphi %s3193_s16, %s3661_s16   ;;  %s3145_s15 = sphi %s3191_s15, %s3660_s15  }
   0xe   : > { %3634 = sst [smem:[#allocation13_spill]] %s3149_s16  ;;  %s2685_s20 = sadd.s32 4294967294, %s3157_s18  }
   0xf   : > { %3635 = sst [smem:[#allocation14_spill]] %s3153_s17  ;;  %s3216_s21 = sadd.s32 1, %s3157_s18  }
  0x10   : > { %3636 = sst [smem:[#allocation15_spill]] %s3157_s18  ;;  %s72_s22 = sadd.s32 1, %s3153_s17 }
  0x11   : > { %3637 = sst [smem:[#allocation16_spill]] %s3216_s21  ;;  %s69_s23 = ssub.s32 %s3157_s18, %s3216_s21 }
  0x12   : > { %p79_p0 = scmp.ne.s32.totalorder %s3153_s17, %s3149_s16  ;;  %p70_p1 = scmp.eq.s32.totalorder %s69_s23, 0 }
  0x13   : > { %p80_p2 = scmp.eq.s32.totalorder %s3157_s18, 0  ;;  %p85_p3 = scmp.ne.s32.totalorder %s3149_s16, %s3145_s15 }
  0x14   : > { %p86_p4 = scmp.eq.s32.totalorder %s3212_s19, 0  ;;  %p135_p7 = scmp.eq.s32.totalorder %s3212_s19, 1 }
  0x15   : > { %s3228_s24 = scalar_select %p70_p1, %s3153_s17, %s72_s22  }
  0x16   : > { %p3230_p5 = por %p80_p2, %p79_p0  ;;  %p3234_p6 = por %p86_p4, %p85_p3 }
  0x17   : > { %3638 = sst [smem:[#allocation17_spill]] %s3228_s24  ;;  %p141_p8 = scmp.eq.s32.totalorder %s2685_s20, 1 }
  0x18   : > { %s3640_s26 = scalar_select %p3234_p6, 1, 0 }
  0x19   : > { %p2995_p10 = scmp.lt.s32.totalorder %s3157_s18, 2  ;;  %p3241_p11 = por %p135_p7, %p79_p0 }
  0x1a   : > { %p3245_p12 = por %p141_p8, %p85_p3  ;;  %s3250_s29 = sand.u32 1, %s3153_s17  }
  0x1b   : > { %s3641_s27 = scalar_select %p3241_p11, 1, 0 }
  0x1c   : > { %s3642_s28 = scalar_select %p3245_p12, 1, 0 }
  0x1d   : > { %s2733_s30 = sshll.u32 %s3157_s18, 10  ;;  %s2688_s5 = sshll.u32 %s3250_s29, 6 }
  0x1e   : > { %3643 = sst [smem:[#allocation18_spill]] %s3642_s28  ;;  %s171_s9 = scalar_lea.vmem [#allocation3], %s2688_s5 }
  0x1f   : > { %s3644_s2 = sld [smem:[#allocation21_spill]]  ;;  %s179_s10 = sshll.u32 %s171_s9, 4  ;;  %s3269_s10 = int_to_ptr.vmem [resolvable:$true] %s179_s10 }
  0x20   : > { %p3265_p13 = pnand %p2995_p10, %p3230_p5  ;;  %s168_s12 = scalar_lea.sflag [#allocation4], %s3250_s29 }
  0x22   : > { %p3035_p1 = pneg %p3265_p13 }
  0x25   : > { %s3259_s8 = scalar_lea.hbm %s3644_s2, %s2733_s30  ;;  %s3038_s22 = scalar_lea.hbm %s3644_s2, 2048 }
  0x26   : > { %s3033_s13 = scalar_lea.hbm %s3259_s8, 1024  ;;  %p3039_p4 = scmp.lt.s32.totalorder %s3259_s8, %s3644_s2 }
  0x27   : > { %p3034_p0 = scmp.ne.s32.totalorder %s3259_s8, %s3033_s13  ;;  %p3040_p5 = scmp.lt.s32.totalorder %s3038_s22, %s3033_s13 }
  0x29   : > { %p3036_p2 = pnand %p3035_p1, %p3034_p0  ;;  %p3041_p7 = por %p3040_p5, %p3039_p4 }
  0x2b   : > { %p3037_p3 = pneg %p3036_p2 }
  0x2d   : > { %p3042_p8 = pnand %p3041_p7, %p3037_p3 }
  0x2f   : > { %3045 = shalt.err (!%p3042_p8)
}
  0x30   : > { %s3046_s6 = scalar_lea.vmem %s3269_s10, 1024  ;;  %s3159_s7 = smov [#allocation3]  }
  0x31   : > { %p3047_p10 = scmp.ne.s32.totalorder %s3269_s10, %s3046_s6  ;;  %s3051_s9 = sshll.u32 %s3159_s7, 4  ;;  %s3052_s9 = int_to_ptr.vmem [resolvable:$false] %s3051_s9 }
  0x32   : > { %s3053_s14 = scalar_lea.vmem %s3052_s9, 2048  ;;  %p3054_p9 = scmp.lt.s32.totalorder %s3269_s10, %s3052_s9 }
  0x33   : > { %p3049_p0 = pnand %p3047_p10, %p3035_p1  ;;  %p3055_p12 = scmp.lt.s32.totalorder %s3053_s14, %s3046_s6 }
  0x35   : > { %p3050_p2 = pneg %p3049_p0  ;;  %p3056_p11 = por %p3055_p12, %p3054_p9 }
  0x37   : > { %p3057_p4 = pnand %p3056_p11, %p3050_p2 }
  0x39   : > { %3060 = shalt.err (!%p3057_p4)
}
  0x3a   : > { %s3160_s13 = smov 128   ;;  %s3161_s20 = smov 8  }
  0x3b   : > { %2987 = dma.hbm_to_vmem [thread:$0]  (!%p3265_p13), %s3259_s8, 1024, %s3269_s10, %s168_s12, %s3160_s13, %s3160_s13, %s3161_s20  }
  0x3c   : > { %p2696_p9 = scmp.ge.s32.totalorder %s3157_s18, 1  ;;  %p209_p11 = scmp.lt.s32.totalorder %s3157_s18, 3 }
  0x3d   : > { %s3647_s3 = sld [smem:[#allocation22_spill]]  ;;  %s193_s7 = scalar_lea.vmem [#allocation6], %s2688_s5 }
  0x3e   : > { %p3303_p12 = pnand %p2696_p9, %p209_p11  ;;  %s201_s9 = sshll.u32 %s193_s7, 4  ;;  %s3316_s9 = int_to_ptr.vmem [resolvable:$true] %s201_s9 }
  0x3f   : > { %s190_s8 = scalar_lea.sflag [#allocation7], %s3250_s29 }
  0x43   : > { %s3312_s6 = scalar_lea.hbm %s3647_s3, %s2733_s30  ;;  %s3066_s30 = scalar_lea.hbm %s3647_s3, 2048 }
  0x44   : > { %s3061_s10 = scalar_lea.hbm %s3312_s6, 1024  ;;  %p3067_p8 = scmp.lt.s32.totalorder %s3312_s6, %s3647_s3 }
  0x45   : > { %p3062_p3 = scmp.ne.s32.totalorder %s3312_s6, %s3061_s10  ;;  %p3068_p10 = scmp.lt.s32.totalorder %s3066_s30, %s3061_s10 }
  0x47   : > { %p3064_p5 = pnand %p3062_p3, %p3035_p1  ;;  %p3069_p0 = por %p3068_p10, %p3067_p8 }
  0x49   : > { %p3065_p7 = pneg %p3064_p5 }
  0x4b   : > { %p3070_p2 = pnand %p3069_p0, %p3065_p7 }
  0x4d   : > { %3073 = shalt.err (!%p3070_p2)
}
  0x4e   : > { %s3074_s29 = scalar_lea.vmem %s3316_s9, 1024  ;;  %s3162_s5 = smov [#allocation6]  }
  0x4f   : > { %p3075_p4 = scmp.ne.s32.totalorder %s3316_s9, %s3074_s29  ;;  %s3079_s7 = sshll.u32 %s3162_s5, 4  ;;  %s3080_s7 = int_to_ptr.vmem [resolvable:$false] %s3079_s7 }
  0x50   : > { %s3081_s12 = scalar_lea.vmem %s3080_s7, 2048  ;;  %p3082_p3 = scmp.lt.s32.totalorder %s3316_s9, %s3080_s7 }
  0x51   : > { %p3077_p9 = pnand %p3075_p4, %p3035_p1  ;;  %p3083_p5 = scmp.lt.s32.totalorder %s3081_s12, %s3074_s29 }
  0x53   : > { %p3078_p11 = pneg %p3077_p9  ;;  %p3084_p6 = por %p3083_p5, %p3082_p3 }
  0x55   : > { %p3085_p8 = pnand %p3084_p6, %p3078_p11 }
  0x57   : > { %3088 = shalt.err (!%p3085_p8)
}
  0x58   : > { %2990 = dma.hbm_to_vmem [thread:$0]  (!%p3265_p13), %s3312_s6, 1024, %s3316_s9, %s190_s8, %s3160_s13, %s3160_s13, %s3161_s20  }
  0x59   : > { %213 = sbr.rel (%p3303_p12) target bundleno = 4609 (0x1201), region = 36  ;;  %s3347_s10 = sand.u32 (!%p3303_p12), 1, %s3149_s16  }
  0x5a   : > { %s2697_s14 = sshll.u32 (!%p3303_p12), %s3347_s10, 6  ;;  %s216_s30 = scalar_lea.sflag (!%p3303_p12), [#allocation4], %s3347_s10 }
  0x5b   : > { %s219_s23 = scalar_lea.vmem (!%p3303_p12), [#allocation3], %s2697_s14  ;;  %p3648_p6 = scmp.ne.s32.totalorder (!%p3303_p12), %s3640_s26, 0 }
  0x5e   : > { %3132 = dma.done.wait (%p3648_p6), %s216_s30, 1024  }
  0x5f   : > { %3134 = vsyncadd (%p3648_p6), %s216_s30, 4294966272  ;;  %s225_s11 = scalar_lea.sflag [#allocation7], %s3347_s10  ;;  %s3356_s13 = scalar_lea.vmem [#allocation6], %s2697_s14 }
  0x60   : > { %3136 = dma.done.wait (%p3648_p6), %s225_s11, 1024  }
  0x61   : > { %3138 = vsyncadd (%p3648_p6), %s225_s11, 4294966272  ;;  %v3163_v0 = vmov 0.0   ;;  %vm3164_vm0 = vmmov 0   ;;  %s3649_s1 = sld [smem:[#allocation20_spill]]  ;;  %v260_v3 = vld [vmem:[%s219_s23] sm:$0xff]  ;;  %v261_v4 = vld [vmem:[%s219_s23 + $0x8] sm:$0xff] }
  0x62   : > { %2796 = vmatprep.subr.mxu0 %v3163_v0  ;;  %2800 = vmatprep.mubr.msk.f32.mxu0 %vm3164_vm0, %v3163_v0  ;;  %v268_v5 = vld [vmem:[%s3356_s13] sm:$0xff]  ;;  %v269_v6 = vld [vmem:[%s3356_s13 + $0x8] sm:$0xff]  ;;  %vm284_vm1 = vcmask 130048   ;;  %v262_v9 = vld [vmem:[%s219_s23 + $0x10] sm:$0xff]  ;;  %s3650_s0 = sld [smem:[#allocation19_spill]]  ;;  %vm408_vm2 = vcmask 64512  }
  0x63   : > { %2803 = vmatprep.subr.mxu1 %v3163_v0  ;;  %2805 = vmatprep.mubr.msk.f32.mxu1 %vm3164_vm0, %v3163_v0  ;;  %v276_v7 = vsub.f32 %v260_v3, %v268_v5  ;;  %v277_v8 = vsub.f32 %v261_v4, %v269_v6  ;;  %v263_v10 = vld [vmem:[%s219_s23 + $0x18] sm:$0xff]  ;;  %v264_v11 = vld [vmem:[%s219_s23 + $0x20] sm:$0xff]  ;;  %v265_v12 = vld [vmem:[%s219_s23 + $0x28] sm:$0xff]  ;;  %p3653_p1 = scmp.ne.s32.totalorder %s3641_s27, 0 }
  0x64   : > { %v266_v13 = vld [vmem:[%s219_s23 + $0x30] sm:$0xff]  ;;  %v267_v14 = vld [vmem:[%s219_s23 + $0x38] sm:$0xff]  ;;  %v272_v17 = vld [vmem:[%s3356_s13 + $0x20] sm:$0xff] }
  0x65   : > { %285 = vst.msk [vmem:[#allocation2] sm:$0xff] %vm284_vm1, %v276_v7  ;;  %286 = vst.msk [vmem:[#allocation2 + $0x8] sm:$0xff] %vm284_vm1, %v277_v8  ;;  %v270_v15 = vld [vmem:[%s3356_s13 + $0x10] sm:$0xff]  ;;  %v271_v16 = vld [vmem:[%s3356_s13 + $0x18] sm:$0xff]  ;;  %v293_v18 = vand.u32 2147483647, %v276_v7  ;;  %v280_v24 = vsub.f32 %v264_v11, %v272_v17 }
  0x66   : > { %v273_v19 = vld [vmem:[%s3356_s13 + $0x28] sm:$0xff]  ;;  %v274_v20 = vld [vmem:[%s3356_s13 + $0x30] sm:$0xff]  ;;  %v275_v21 = vld [vmem:[%s3356_s13 + $0x38] sm:$0xff]  ;;  %v278_v22 = vsub.f32 %v262_v9, %v270_v15  ;;  %v279_v23 = vsub.f32 %v263_v10, %v271_v16  ;;  %v294_v25 = vand.u32 2147483647, %v277_v8 }
  0x67   : > { %v3371_v1 = vld [vmem:[%s3649_s1 + $0x8] sm:$0xff]  ;;  %v3376_v2 = vld [vmem:[%s3649_s1] sm:$0xff]  ;;  %v281_v26 = vsub.f32 %v265_v12, %v273_v19  ;;  %v282_v27 = vsub.f32 %v266_v13, %v274_v20  ;;  %v283_v28 = vsub.f32 %v267_v14, %v275_v21  ;;  %289 = vst.msk [vmem:[#allocation2 + $0x20] sm:$0xff] %vm284_vm1, %v280_v24  ;;  %v301_v31 = vsel %vm284_vm1, %v293_v18, 0.0 }
  0x68   : > { %2797 = vmatpush3.msra.mxu0 %v3371_v1  ;;  %287 = vst.msk [vmem:[#allocation2 + $0x10] sm:$0xff] %vm284_vm1, %v278_v22  ;;  %288 = vst.msk [vmem:[#allocation2 + $0x18] sm:$0xff] %vm284_vm1, %v279_v23  ;;  %v295_v29 = vand.u32 2147483647, %v278_v22  ;;  %v296_v30 = vand.u32 2147483647, %v279_v23 }
  0x69   : > { %2798 = vmatprep.subr.mxu0 %v3163_v0  ;;  %290 = vst.msk [vmem:[#allocation2 + $0x28] sm:$0xff] %vm284_vm1, %v281_v26  ;;  %291 = vst.msk [vmem:[#allocation2 + $0x30] sm:$0xff] %vm284_vm1, %v282_v27  ;;  %v297_v32 = vand.u32 2147483647, %v280_v24  ;;  %v302_v33 = vsel %vm284_vm1, %v294_v25, 0.0  ;;  %v3412_v54 = vld [vmem:[%s3650_s0] sm:$0xff] }
  0x6a   : > { %2799 = vmatpush3.msra.mxu0 %v3376_v2  ;;  %292 = vst.msk [vmem:[#allocation2 + $0x38] sm:$0xff] %vm284_vm1, %v283_v28  ;;  %v304_v34 = vsel %vm284_vm1, %v295_v29, 0.0  ;;  %v298_v35 = vand.u32 2147483647, %v281_v26  ;;  %v303_v36 = vadd.f32 %v302_v33, %v301_v31  ;;  %v306_v39 = vsel %vm284_vm1, %v296_v30, 0.0 }
  0x6b   : > { %2813 = vmatprep.subr.mxu0 %v3163_v0  ;;  %v299_v42 = vand.u32 2147483647, %v282_v27  ;;  %v308_v43 = vsel %vm284_vm1, %v297_v32, 0.0  ;;  %v300_v46 = vand.u32 2147483647, %v283_v28 }
  0x6c   : > { %v329_v37 = vld [vmem:[#allocation2] ss:$2 sm:$0xff]  ;;  %v331_v38 = vld [vmem:[#allocation2 + $0x1] ss:$2 sm:$0xff]  ;;  %v305_v41 = vadd.f32 %v304_v34, %v303_v36  ;;  %v310_v47 = vsel %vm284_vm1, %v298_v35, 0.0 }
  0x6d   : > { %v332_v40 = vadd.f32 %v331_v38, %v329_v37  ;;  %v312_v49 = vsel %vm284_vm1, %v299_v42, 0.0  ;;  %v314_v51 = vsel %vm284_vm1, %v300_v46, 0.0 }
  0x6e   : > { %v307_v45 = vadd.f32 %v306_v39, %v305_v41 }
  0x6f   : > { %v333_v44 = vmul.f32 0.5, %v332_v40  ;;  %v893_v27 = vld [vmem:[#allocation2 + $0x10] ss:$2 sm:$0xff]  ;;  %v895_v28 = vld [vmem:[#allocation2 + $0x11] ss:$2 sm:$0xff] }
  0x70   : > { %v309_v48 = vadd.f32 %v308_v43, %v307_v45  ;;  %v896_v29 = vadd.f32 %v895_v28, %v893_v27 }
  0x71   : > { %2801 = vmatmul.mubr.msk.f32.vlgmr.msra.gmra.mxu0 %vm284_vm1, %v333_v44 }
  0x72   : > { %2815 = vmatprep.mubr.msk.f32.mxu0 %vm3164_vm0, %v3163_v0  ;;  %v311_v50 = vadd.f32 %v310_v47, %v309_v48  ;;  %v897_v33 = vmul.f32 0.5, %v896_v29 }
  0x74   : > { %v313_v52 = vadd.f32 %v312_v49, %v311_v50 }
  0x76   : > { %v315_v53 = vadd.f32 %v314_v51, %v313_v52 }
  0x78   : > { %316 = vadd.xlane.f32.xlu0 %v315_v53 }
 0x101   : > { %v317_v59 = vpop.xlane.xlu0 %316 }
 0x102   : > { %v318_v60 = vrot.slane %v317_v59, 4 }
 0x104   : > { %v319_v61 = vadd.f32 %v318_v60, %v317_v59 }
 0x106   : > { %v320_v62 = vrot.slane %v319_v61, 2 }
 0x108   : > { %v321_v63 = vadd.f32 %v320_v62, %v319_v61 }
 0x10a   : > { %v322_v3 = vrot.slane %v321_v63, 1 }
 0x10c   : > { %v323_v4 = vadd.f32 %v322_v3, %v321_v63 }
 0x10e   : > { %2944 = vpush %v323_v4 }
 0x131   : > { %v403_v55 = vpop.f32.mrf.mxu0 }
 0x132   : > { %v407_v56 = vand.u32 2147483647, %v403_v55  ;;  %2804 = vmatpush3.msra.mxu1 %v403_v55 }
 0x133   : > { %v2802_v57 = vpop.f32.mrf.mxu0  ;;  %2806 = vmatmul.mubr.msk.f32.vlgmr.msra.gmra.mxu1 %vm408_vm2, %v3412_v54  ;;  %2808 = vmatprep.subr.mxu1 %v3163_v0 }
 0x134   : > { %v409_v58 = vsel %vm408_vm2, %v407_v56, 0.0  ;;  %2809 = vmatpush3.msra.mxu1 %v3376_v2  ;;  %2810 = vmatprep.mubr.msk.f32.mxu1 %vm3164_vm0, %v3163_v0 }
 0x135   : > { %410 = vadd.xlane.f32.xlu0 %v409_v58  ;;  %2818 = vmatprep.subr.mxu1 %v3163_v0 }
 0x13f   : > { %s3565_s25 = spop %2944 }
 0x1be   : > { %v411_v5 = vpop.xlane.xlu0 %410 }
 0x1bf   : > { %v412_v6 = vrot.slane %v411_v5, 4 }
 0x1c1   : > { %v413_v7 = vadd.f32 %v412_v6, %v411_v5 }
 0x1c3   : > { %v414_v8 = vrot.slane %v413_v7, 2 }
 0x1c5   : > { %v415_v9 = vadd.f32 %v414_v8, %v413_v7 }
 0x1c7   : > { %v416_v10 = vrot.slane %v415_v9, 1 }
 0x1c9   : > { %v417_v11 = vadd.f32 %v416_v10, %v415_v9 }
 0x1cb   : > { %2946 = vpush %v417_v11 }
 0x1f3   : > { %v489_v12 = vpop.f32.mrf.mxu1 }
 0x1f4   : > { %2811 = vmatmul.mubr.msk.f32.vlgmr.msra.gmra.mxu1 %vm408_vm2, %v489_v12 }
 0x1f5   : > { %v2807_v13 = vpop.f32.mrf.mxu1  ;;  %2819 = vmatpush3.msra.mxu1 %v3376_v2  ;;  %2820 = vmatprep.mubr.msk.f32.mxu1 %vm3164_vm0, %v3163_v0 }
 0x1f6   : > { %2828 = vmatprep.subr.mxu1 %v3163_v0 }
 0x1fc   : > { %s2947_s29 = spop %2946 }
 0x1fd   : > { %s419_s11 = smul.f32 0.0009765625, %s2947_s29 }
 0x2b4   : > { %v562_v14 = vpop.f32.mrf.mxu1 }
 0x2b5   : > { %2814 = vmatpush3.msra.mxu0 %v562_v14  ;;  %v566_v15 = vand.u32 2147483647, %v562_v14 }
 0x2b6   : > { %v2812_v16 = vpop.f32.mrf.mxu1  ;;  %2816 = vmatmul.mubr.msk.f32.vlgmr.msra.gmra.mxu0 %vm408_vm2, %v3412_v54  ;;  %2823 = vmatprep.subr.mxu0 %v3163_v0 }
 0x2b7   : > { %v567_v17 = vsel %vm408_vm2, %v566_v15, 0.0  ;;  %2825 = vmatprep.mubr.msk.f32.mxu0 %vm3164_vm0, %v3163_v0 }
 0x2b8   : > { %568 = vadd.xlane.f32.xlu1 %v567_v17 }
 0x341   : > { %v569_v18 = vpop.xlane.xlu1 %568 }
 0x342   : > { %v570_v19 = vrot.slane %v569_v18, 4 }
 0x344   : > { %v571_v20 = vadd.f32 %v570_v19, %v569_v18 }
 0x346   : > { %v572_v21 = vrot.slane %v571_v20, 2 }
 0x348   : > { %v573_v22 = vadd.f32 %v572_v21, %v571_v20  ;;  %v1453_v21 = vld [vmem:[#allocation2 + $0x20] ss:$2 sm:$0xff] }
 0x34a   : > { %v574_v23 = vrot.slane %v573_v22, 1 }
 0x34c   : > { %v575_v24 = vadd.f32 %v574_v23, %v573_v22  ;;  %v1455_v22 = vld [vmem:[#allocation2 + $0x21] ss:$2 sm:$0xff] }
 0x34d   : > { %v1456_v23 = vadd.f32 %v1455_v22, %v1453_v21 }
 0x34e   : > { %2948 = vpush %v575_v24 }
 0x34f   : > { %v1457_v27 = vmul.f32 0.5, %v1456_v23 }
 0x376   : > { %v645_v25 = vpop.f32.mrf.mxu0 }
 0x377   : > { %2821 = vmatmul.mubr.msk.f32.vlgmr.msra.gmra.mxu1 %vm408_vm2, %v645_v25 }
 0x378   : > { %v2817_v26 = vpop.f32.mrf.mxu0  ;;  %2829 = vmatpush3.msra.mxu1 %v3376_v2  ;;  %2830 = vmatprep.mubr.msk.f32.mxu1 %vm3164_vm0, %v3163_v0 }
 0x379   : > { %2840 = vmatprep.subr.mxu1 %v3163_v0 }
 0x37f   : > { %s2949_s5 = spop %2948 }
 0x380   : > { %s577_s14 = smul.f32 0.001953125, %s2949_s5 }
 0x382   : > { %s578_s26 = sadd.f32 %s577_s14, %s419_s11 }
 0x437   : > { %v718_v30 = vpop.f32.mrf.mxu1 }
 0x438   : > { %v722_v31 = vand.u32 2147483647, %v718_v30  ;;  %2824 = vmatpush3.msra.mxu0 %v718_v30 }
 0x439   : > { %v2822_v32 = vpop.f32.mrf.mxu1  ;;  %2826 = vmatmul.mubr.msk.f32.vlgmr.msra.gmra.mxu0 %vm408_vm2, %v3412_v54  ;;  %2833 = vmatprep.subr.mxu0 %v3163_v0 }
 0x43a   : > { %2834 = vmatpush3.msra.mxu0 %v3371_v1  ;;  %v723_v34 = vsel %vm408_vm2, %v722_v31, 0.0  ;;  %2837 = vmatprep.mubr.msk.f32.mxu0 %vm3164_vm0, %v3163_v0 }
 0x43b   : > { %2835 = vmatprep.subr.mxu0 %v3163_v0  ;;  %724 = vadd.xlane.f32.xlu1 %v723_v34 }
 0x43c   : > { %2836 = vmatpush3.msra.mxu0 %v3376_v2 }
 0x43d   : > { %2838 = vmatmul.mubr.msk.f32.vlgmr.msra.gmra.mxu0 %vm284_vm1, %v897_v33  ;;  %2845 = vmatprep.subr.mxu0 %v3163_v0 }
 0x43e   : > { %2846 = vmatpush3.msra.mxu0 %v3376_v2  ;;  %2847 = vmatprep.mubr.msk.f32.mxu0 %vm3164_vm0, %v3163_v0 }
 0x43f   : > { %2855 = vmatprep.subr.mxu0 %v3163_v0 }
 0x4c4   : > { %v725_v35 = vpop.xlane.xlu1 %724 }
 0x4c5   : > { %v726_v36 = vrot.slane %v725_v35, 4 }
 0x4c7   : > { %v727_v37 = vadd.f32 %v726_v36, %v725_v35 }
 0x4c9   : > { %v728_v38 = vrot.slane %v727_v37, 2 }
 0x4cb   : > { %v729_v39 = vadd.f32 %v728_v38, %v727_v37 }
 0x4cd   : > { %v730_v40 = vrot.slane %v729_v39, 1 }
 0x4cf   : > { %v731_v41 = vadd.f32 %v730_v40, %v729_v39 }
 0x4d1   : > { %2950 = vpush %v731_v41 }
 0x4f9   : > { %v801_v42 = vpop.f32.mrf.mxu0 }
 0x4fa   : > { %2831 = vmatmul.mubr.msk.f32.vlgmr.msra.gmra.mxu1 %vm408_vm2, %v801_v42 }
 0x4fb   : > { %v2827_v43 = vpop.f32.mrf.mxu0  ;;  %2842 = vmatprep.mubr.msk.f32.mxu1 %vm3164_vm0, %v3163_v0 }
 0x4fd   : > { %v967_v44 = vpop.f32.mrf.mxu0 }
 0x4fe   : > { %v971_v45 = vand.u32 2147483647, %v967_v44  ;;  %2841 = vmatpush3.msra.mxu1 %v967_v44 }
 0x4ff   : > { %v2839_v46 = vpop.f32.mrf.mxu0  ;;  %2843 = vmatmul.mubr.msk.f32.vlgmr.msra.gmra.mxu1 %vm408_vm2, %v3412_v54  ;;  %2850 = vmatprep.subr.mxu1 %v3163_v0 }
 0x500   : > { %v972_v47 = vsel %vm408_vm2, %v971_v45, 0.0  ;;  %2852 = vmatprep.mubr.msk.f32.mxu1 %vm3164_vm0, %v3163_v0 }
 0x501   : > { %973 = vadd.xlane.f32.xlu1 %v972_v47 }
 0x502   : > { %s2951_s7 = spop %2950 }
 0x503   : > { %s733_s20 = smul.f32 0.00390625, %s2951_s7 }
 0x505   : > { %s734_s2 = sadd.f32 %s733_s20, %s578_s26 }
 0x58a   : > { %v974_v55 = vpop.xlane.xlu1 %973 }
 0x58b   : > { %v975_v56 = vrot.slane %v974_v55, 4 }
 0x58d   : > { %v976_v57 = vadd.f32 %v975_v56, %v974_v55 }
 0x58f   : > { %v977_v58 = vrot.slane %v976_v57, 2 }
 0x591   : > { %v978_v62 = vadd.f32 %v977_v58, %v976_v57 }
 0x593   : > { %v979_v4 = vrot.slane %v978_v62, 1 }
 0x595   : > { %v980_v7 = vadd.f32 %v979_v4, %v978_v62 }
 0x5ba   : > { %v874_v48 = vpop.f32.mrf.mxu1 }
 0x5bb   : > { %v878_v49 = vand.u32 2147483647, %v874_v48 }
 0x5bc   : > { %v2832_v50 = vpop.f32.mrf.mxu1 }
 0x5bd   : > { %v879_v51 = vsel %vm408_vm2, %v878_v49, 0.0 }
 0x5be   : > { %880 = vadd.xlane.f32.xlu0 %v879_v51 }
 0x5bf   : > { %v1049_v52 = vpop.f32.mrf.mxu1 }
 0x5c0   : > { %2848 = vmatmul.mubr.msk.f32.vlgmr.msra.gmra.mxu0 %vm408_vm2, %v1049_v52 }
 0x5c1   : > { %v2844_v53 = vpop.f32.mrf.mxu1  ;;  %2856 = vmatpush3.msra.mxu0 %v3376_v2  ;;  %2857 = vmatprep.mubr.msk.f32.mxu0 %vm3164_vm0, %v3163_v0 }
 0x5c2   : > { %2865 = vmatprep.subr.mxu0 %v3163_v0 }
 0x647   : > { %v881_v59 = vpop.xlane.xlu0 %880 }
 0x648   : > { %v882_v60 = vrot.slane %v881_v59, 4 }
 0x64a   : > { %v883_v61 = vadd.f32 %v882_v60, %v881_v59 }
 0x64c   : > { %v884_v63 = vrot.slane %v883_v61, 2 }
 0x64e   : > { %v885_v3 = vadd.f32 %v884_v63, %v883_v61 }
 0x650   : > { %v886_v5 = vrot.slane %v885_v3, 1 }
 0x652   : > { %v887_v6 = vadd.f32 %v886_v5, %v885_v3 }
 0x654   : > { %2952 = vpush %v887_v6 }
 0x655   : > { %2954 = vpush %v980_v7 }
 0x680   : > { %v1122_v8 = vpop.f32.mrf.mxu0 }
 0x681   : > { %v1126_v9 = vand.u32 2147483647, %v1122_v8  ;;  %2851 = vmatpush3.msra.mxu1 %v1122_v8 }
 0x682   : > { %v2849_v10 = vpop.f32.mrf.mxu0  ;;  %2853 = vmatmul.mubr.msk.f32.vlgmr.msra.gmra.mxu1 %vm408_vm2, %v3412_v54  ;;  %2860 = vmatprep.subr.mxu1 %v3163_v0 }
 0x683   : > { %v1127_v11 = vsel %vm408_vm2, %v1126_v9, 0.0  ;;  %2862 = vmatprep.mubr.msk.f32.mxu1 %vm3164_vm0, %v3163_v0 }
 0x684   : > { %1128 = vadd.xlane.f32.xlu0 %v1127_v11 }
 0x685   : > { %s3567_s12 = spop %2952 }
 0x686   : > { %s2955_s30 = spop %2954  ;;  %s889_s15 = smul.f32 0.015625, %s3567_s12 }
 0x687   : > { %s982_s9 = smul.f32 0.0009765625, %s2955_s30  ;;  %s2729_s12 = sshll.u32 %s3212_s19, 7 }
 0x70d   : > { %v1129_v12 = vpop.xlane.xlu0 %1128 }
 0x70e   : > { %v1130_v13 = vrot.slane %v1129_v12, 4 }
 0x710   : > { %v1131_v14 = vadd.f32 %v1130_v13, %v1129_v12 }
 0x712   : > { %v1132_v15 = vrot.slane %v1131_v14, 2 }
 0x714   : > { %v1133_v16 = vadd.f32 %v1132_v15, %v1131_v14  ;;  %v2013_v15 = vld [vmem:[#allocation2 + $0x30] ss:$2 sm:$0xff] }
 0x716   : > { %v1134_v17 = vrot.slane %v1133_v16, 1 }
 0x718   : > { %v1135_v18 = vadd.f32 %v1134_v17, %v1133_v16  ;;  %v2015_v16 = vld [vmem:[#allocation2 + $0x31] ss:$2 sm:$0xff] }
 0x719   : > { %v2016_v17 = vadd.f32 %v2015_v16, %v2013_v15 }
 0x71a   : > { %2956 = vpush %v1135_v18 }
 0x71b   : > { %v2017_v21 = vmul.f32 0.5, %v2016_v17 }
 0x742   : > { %v1205_v19 = vpop.f32.mrf.mxu1 }
 0x743   : > { %2858 = vmatmul.mubr.msk.f32.vlgmr.msra.gmra.mxu0 %vm408_vm2, %v1205_v19 }
 0x744   : > { %v2854_v20 = vpop.f32.mrf.mxu1  ;;  %2866 = vmatpush3.msra.mxu0 %v3376_v2  ;;  %2867 = vmatprep.mubr.msk.f32.mxu0 %vm3164_vm0, %v3163_v0 }
 0x745   : > { %2877 = vmatprep.subr.mxu0 %v3163_v0 }
 0x74b   : > { %s2957_s23 = spop %2956 }
 0x74c   : > { %s1137_s6 = smul.f32 0.001953125, %s2957_s23 }
 0x74e   : > { %s1138_s3 = sadd.f32 %s1137_s6, %s982_s9 }
 0x74f   : > { %s890_s6 = sadd.f32 %s889_s15, %s734_s2 }
 0x750   : > { %s3651_s15 = sld [smem:[#allocation23_spill]] }
 0x803   : > { %v1278_v24 = vpop.f32.mrf.mxu0 }
 0x804   : > { %v1282_v25 = vand.u32 2147483647, %v1278_v24  ;;  %2861 = vmatpush3.msra.mxu1 %v1278_v24 }
 0x805   : > { %v2859_v26 = vpop.f32.mrf.mxu0  ;;  %2863 = vmatmul.mubr.msk.f32.vlgmr.msra.gmra.mxu1 %vm408_vm2, %v3412_v54  ;;  %2870 = vmatprep.subr.mxu1 %v3163_v0 }
 0x806   : > { %2871 = vmatpush3.msra.mxu1 %v3371_v1  ;;  %v1283_v28 = vsel %vm408_vm2, %v1282_v25, 0.0  ;;  %2874 = vmatprep.mubr.msk.f32.mxu1 %vm3164_vm0, %v3163_v0 }
 0x807   : > { %2872 = vmatprep.subr.mxu1 %v3163_v0  ;;  %1284 = vadd.xlane.f32.xlu1 %v1283_v28 }
 0x808   : > { %2873 = vmatpush3.msra.mxu1 %v3376_v2 }
 0x809   : > { %2875 = vmatmul.mubr.msk.f32.vlgmr.msra.gmra.mxu1 %vm284_vm1, %v1457_v27  ;;  %2882 = vmatprep.subr.mxu1 %v3163_v0 }
 0x80a   : > { %2883 = vmatpush3.msra.mxu1 %v3376_v2  ;;  %2884 = vmatprep.mubr.msk.f32.mxu1 %vm3164_vm0, %v3163_v0 }
 0x80b   : > { %2892 = vmatprep.subr.mxu1 %v3163_v0 }
 0x890   : > { %v1285_v29 = vpop.xlane.xlu1 %1284 }
 0x891   : > { %v1286_v30 = vrot.slane %v1285_v29, 4 }
 0x893   : > { %v1287_v31 = vadd.f32 %v1286_v30, %v1285_v29 }
 0x895   : > { %v1288_v32 = vrot.slane %v1287_v31, 2 }
 0x897   : > { %v1289_v33 = vadd.f32 %v1288_v32, %v1287_v31 }
 0x899   : > { %v1290_v34 = vrot.slane %v1289_v33, 1 }
 0x89b   : > { %v1291_v35 = vadd.f32 %v1290_v34, %v1289_v33 }
 0x89d   : > { %2958 = vpush %v1291_v35 }
 0x8c5   : > { %v1361_v36 = vpop.f32.mrf.mxu1 }
 0x8c6   : > { %2868 = vmatmul.mubr.msk.f32.vlgmr.msra.gmra.mxu0 %vm408_vm2, %v1361_v36 }
 0x8c7   : > { %v2864_v37 = vpop.f32.mrf.mxu1  ;;  %2879 = vmatprep.mubr.msk.f32.mxu0 %vm3164_vm0, %v3163_v0 }
 0x8c9   : > { %v1527_v38 = vpop.f32.mrf.mxu1 }
 0x8ca   : > { %v1531_v39 = vand.u32 2147483647, %v1527_v38  ;;  %2878 = vmatpush3.msra.mxu0 %v1527_v38 }
 0x8cb   : > { %v2876_v40 = vpop.f32.mrf.mxu1  ;;  %2880 = vmatmul.mubr.msk.f32.vlgmr.msra.gmra.mxu0 %vm408_vm2, %v3412_v54  ;;  %2887 = vmatprep.subr.mxu0 %v3163_v0 }
 0x8cc   : > { %v1532_v41 = vsel %vm408_vm2, %v1531_v39, 0.0  ;;  %2889 = vmatprep.mubr.msk.f32.mxu0 %vm3164_vm0, %v3163_v0 }
 0x8cd   : > { %1533 = vadd.xlane.f32.xlu1 %v1532_v41 }
 0x8ce   : > { %s2959_s13 = spop %2958 }
 0x8cf   : > { %s1293_s0 = smul.f32 0.00390625, %s2959_s13 }
 0x8d1   : > { %s1294_s21 = sadd.f32 %s1293_s0, %s1138_s3  ;;  %s2699_s3 = sshll.u32 %s3347_s10, 3 }
 0x956   : > { %v1534_v48 = vpop.xlane.xlu1 %1533 }
 0x957   : > { %v1535_v49 = vrot.slane %v1534_v48, 4 }
 0x959   : > { %v1536_v50 = vadd.f32 %v1535_v49, %v1534_v48 }
 0x95b   : > { %v1537_v51 = vrot.slane %v1536_v50, 2 }
 0x95d   : > { %v1538_v56 = vadd.f32 %v1537_v51, %v1536_v50 }
 0x95f   : > { %v1539_v59 = vrot.slane %v1538_v56, 1 }
 0x961   : > { %v1540_v62 = vadd.f32 %v1539_v59, %v1538_v56 }
 0x986   : > { %v1434_v42 = vpop.f32.mrf.mxu0 }
 0x987   : > { %v1438_v43 = vand.u32 2147483647, %v1434_v42 }
 0x988   : > { %v2869_v44 = vpop.f32.mrf.mxu0 }
 0x989   : > { %v1439_v45 = vsel %vm408_vm2, %v1438_v43, 0.0 }
 0x98a   : > { %1440 = vadd.xlane.f32.xlu0 %v1439_v45 }
 0x98b   : > { %v1609_v46 = vpop.f32.mrf.mxu0 }
 0x98c   : > { %2885 = vmatmul.mubr.msk.f32.vlgmr.msra.gmra.mxu1 %vm408_vm2, %v1609_v46 }
 0x98d   : > { %v2881_v47 = vpop.f32.mrf.mxu0  ;;  %2893 = vmatpush3.msra.mxu1 %v3376_v2  ;;  %2894 = vmatprep.mubr.msk.f32.mxu1 %vm3164_vm0, %v3163_v0 }
 0x98e   : > { %2902 = vmatprep.subr.mxu1 %v3163_v0 }
 0xa13   : > { %v1441_v52 = vpop.xlane.xlu0 %1440 }
 0xa14   : > { %v1442_v53 = vrot.slane %v1441_v52, 4 }
 0xa16   : > { %v1443_v55 = vadd.f32 %v1442_v53, %v1441_v52 }
 0xa18   : > { %v1444_v57 = vrot.slane %v1443_v55, 2 }
 0xa1a   : > { %v1445_v58 = vadd.f32 %v1444_v57, %v1443_v55 }
 0xa1c   : > { %v1446_v60 = vrot.slane %v1445_v58, 1 }
 0xa1e   : > { %v1447_v61 = vadd.f32 %v1446_v60, %v1445_v58 }
 0xa20   : > { %2960 = vpush %v1447_v61 }
 0xa21   : > { %2962 = vpush %v1540_v62 }
 0xa4c   : > { %v1682_v63 = vpop.f32.mrf.mxu1 }
 0xa4d   : > { %v1686_v3 = vand.u32 2147483647, %v1682_v63  ;;  %2888 = vmatpush3.msra.mxu0 %v1682_v63 }
 0xa4e   : > { %v2886_v4 = vpop.f32.mrf.mxu1  ;;  %2890 = vmatmul.mubr.msk.f32.vlgmr.msra.gmra.mxu0 %vm408_vm2, %v3412_v54  ;;  %2897 = vmatprep.subr.mxu0 %v3163_v0 }
 0xa4f   : > { %v1687_v5 = vsel %vm408_vm2, %v1686_v3, 0.0  ;;  %2899 = vmatprep.mubr.msk.f32.mxu0 %vm3164_vm0, %v3163_v0 }
 0xa50   : > { %1688 = vadd.xlane.f32.xlu0 %v1687_v5 }
 0xa51   : > { %s2961_s22 = spop %2960 }
 0xa52   : > { %s2963_s8 = spop %2962  ;;  %s1449_s5 = smul.f32 0.015625, %s2961_s22 }
 0xa53   : > { %s1542_s18 = smul.f32 0.0009765625, %s2963_s8 }
 0xa54   : > { %s1450_s30 = sadd.f32 %s1449_s5, %s1294_s21  ;;  %s257_s5 = scalar_lea.vmem [#allocation8], %s2699_s3 }
 0xa56   : > { %s1451_s22 = sadd.f32 %s1450_s30, %s890_s6 }
 0xad9   : > { %v1689_v6 = vpop.xlane.xlu0 %1688 }
 0xada   : > { %v1690_v7 = vrot.slane %v1689_v6, 4 }
 0xadc   : > { %v1691_v8 = vadd.f32 %v1690_v7, %v1689_v6 }
 0xade   : > { %v1692_v9 = vrot.slane %v1691_v8, 2 }
 0xae0   : > { %v1693_v10 = vadd.f32 %v1692_v9, %v1691_v8 }
 0xae2   : > { %v1694_v11 = vrot.slane %v1693_v10, 1 }
 0xae4   : > { %v1695_v12 = vadd.f32 %v1694_v11, %v1693_v10 }
 0xae6   : > { %2964 = vpush %v1695_v12 }
 0xb0e   : > { %v1765_v13 = vpop.f32.mrf.mxu0 }
 0xb0f   : > { %2895 = vmatmul.mubr.msk.f32.vlgmr.msra.gmra.mxu1 %vm408_vm2, %v1765_v13 }
 0xb10   : > { %v2891_v14 = vpop.f32.mrf.mxu0  ;;  %2903 = vmatpush3.msra.mxu1 %v3376_v2  ;;  %2904 = vmatprep.mubr.msk.f32.mxu1 %vm3164_vm0, %v3163_v0 }
 0xb11   : > { %2914 = vmatprep.subr.mxu1 %v3163_v0 }
 0xb17   : > { %s2965_s1 = spop %2964 }
 0xb18   : > { %s1697_s17 = smul.f32 0.001953125, %s2965_s1 }
 0xb1a   : > { %s1698_s14 = sadd.f32 %s1697_s17, %s1542_s18  ;;  %s325_s18 = smul.f32 0.00048828125, %s3565_s25 }
 0xbcf   : > { %v1838_v18 = vpop.f32.mrf.mxu1 }
 0xbd0   : > { %v1842_v19 = vand.u32 2147483647, %v1838_v18  ;;  %2898 = vmatpush3.msra.mxu0 %v1838_v18 }
 0xbd1   : > { %v2896_v20 = vpop.f32.mrf.mxu1  ;;  %2900 = vmatmul.mubr.msk.f32.vlgmr.msra.gmra.mxu0 %vm408_vm2, %v3412_v54  ;;  %2907 = vmatprep.subr.mxu0 %v3163_v0 }
 0xbd2   : > { %2908 = vmatpush3.msra.mxu0 %v3371_v1  ;;  %v1843_v22 = vsel %vm408_vm2, %v1842_v19, 0.0  ;;  %2911 = vmatprep.mubr.msk.f32.mxu0 %vm3164_vm0, %v3163_v0 }
 0xbd3   : > { %2909 = vmatprep.subr.mxu0 %v3163_v0  ;;  %1844 = vadd.xlane.f32.xlu1 %v1843_v22 }
 0xbd4   : > { %2910 = vmatpush3.msra.mxu0 %v3376_v2 }
 0xbd5   : > { %2912 = vmatmul.mubr.msk.f32.vlgmr.msra.gmra.mxu0 %vm284_vm1, %v2017_v21  ;;  %2919 = vmatprep.subr.mxu0 %v3163_v0 }
 0xbd6   : > { %2920 = vmatpush3.msra.mxu0 %v3376_v2  ;;  %2921 = vmatprep.mubr.msk.f32.mxu0 %vm3164_vm0, %v3163_v0 }
 0xbd7   : > { %2929 = vmatprep.subr.mxu0 %v3163_v0 }
 0xc5c   : > { %v1845_v1 = vpop.xlane.xlu1 %1844 }
 0xc5d   : > { %v1846_v23 = vrot.slane %v1845_v1, 4 }
 0xc5f   : > { %v1847_v24 = vadd.f32 %v1846_v23, %v1845_v1 }
 0xc61   : > { %v1848_v25 = vrot.slane %v1847_v24, 2 }
 0xc63   : > { %v1849_v26 = vadd.f32 %v1848_v25, %v1847_v24 }
 0xc65   : > { %v1850_v27 = vrot.slane %v1849_v26, 1 }
 0xc67   : > { %v1851_v28 = vadd.f32 %v1850_v27, %v1849_v26 }
 0xc69   : > { %2966 = vpush %v1851_v28 }
 0xc91   : > { %v1921_v29 = vpop.f32.mrf.mxu0 }
 0xc92   : > { %2905 = vmatmul.mubr.msk.f32.vlgmr.msra.gmra.mxu1 %vm408_vm2, %v1921_v29 }
 0xc93   : > { %v2901_v30 = vpop.f32.mrf.mxu0  ;;  %2916 = vmatprep.mubr.msk.f32.mxu1 %vm3164_vm0, %v3163_v0 }
 0xc95   : > { %v2087_v31 = vpop.f32.mrf.mxu0 }
 0xc96   : > { %v2091_v32 = vand.u32 2147483647, %v2087_v31  ;;  %2915 = vmatpush3.msra.mxu1 %v2087_v31 }
 0xc97   : > { %v2913_v33 = vpop.f32.mrf.mxu0  ;;  %2917 = vmatmul.mubr.msk.f32.vlgmr.msra.gmra.mxu1 %vm408_vm2, %v3412_v54  ;;  %2924 = vmatprep.subr.mxu1 %v3163_v0 }
 0xc98   : > { %v2092_v34 = vsel %vm408_vm2, %v2091_v32, 0.0  ;;  %2926 = vmatprep.mubr.msk.f32.mxu1 %vm3164_vm0, %v3163_v0 }
 0xc99   : > { %2093 = vadd.xlane.f32.xlu1 %v2092_v34 }
 0xc9a   : > { %s2967_s24 = spop %2966 }
 0xc9b   : > { %s1853_s28 = smul.f32 0.00390625, %s2967_s24 }
 0xc9d   : > { %s1854_s20 = sadd.f32 %s1853_s28, %s1698_s14  ;;  %s3652_s14 = smov %s3651_s15 }
 0xd22   : > { %v2094_v41 = vpop.xlane.xlu1 %2093 }
 0xd23   : > { %v2095_v42 = vrot.slane %v2094_v41, 4 }
 0xd25   : > { %v2096_v43 = vadd.f32 %v2095_v42, %v2094_v41 }
 0xd27   : > { %v2097_v44 = vrot.slane %v2096_v43, 2 }
 0xd29   : > { %v2098_v48 = vadd.f32 %v2097_v44, %v2096_v43 }
 0xd2b   : > { %v2099_v51 = vrot.slane %v2098_v48, 1 }
 0xd2d   : > { %v2100_v55 = vadd.f32 %v2099_v51, %v2098_v48 }
 0xd52   : > { %v1994_v35 = vpop.f32.mrf.mxu1 }
 0xd53   : > { %v1998_v36 = vand.u32 2147483647, %v1994_v35 }
 0xd54   : > { %v2906_v37 = vpop.f32.mrf.mxu1 }
 0xd55   : > { %v1999_v38 = vsel %vm408_vm2, %v1998_v36, 0.0 }
 0xd56   : > { %2000 = vadd.xlane.f32.xlu0 %v1999_v38 }
 0xd57   : > { %v2169_v39 = vpop.f32.mrf.mxu1 }
 0xd58   : > { %2922 = vmatmul.mubr.msk.f32.vlgmr.msra.gmra.mxu0 %vm408_vm2, %v2169_v39 }
 0xd59   : > { %v2918_v40 = vpop.f32.mrf.mxu1  ;;  %2930 = vmatpush3.msra.mxu0 %v3376_v2  ;;  %2931 = vmatprep.mubr.msk.f32.mxu0 %vm3164_vm0, %v3163_v0 }
 0xd5a   : > { %2939 = vmatprep.subr.mxu0 %v3163_v0 }
 0xddf   : > { %v2001_v45 = vpop.xlane.xlu0 %2000 }
 0xde0   : > { %v2002_v46 = vrot.slane %v2001_v45, 4 }
 0xde2   : > { %v2003_v47 = vadd.f32 %v2002_v46, %v2001_v45 }
 0xde4   : > { %v2004_v49 = vrot.slane %v2003_v47, 2 }
 0xde6   : > { %v2005_v50 = vadd.f32 %v2004_v49, %v2003_v47 }
 0xde8   : > { %v2006_v52 = vrot.slane %v2005_v50, 1 }
 0xdea   : > { %v2007_v53 = vadd.f32 %v2006_v52, %v2005_v50 }
 0xdec   : > { %2968 = vpush %v2007_v53 }
 0xded   : > { %2970 = vpush %v2100_v55 }
 0xe18   : > { %v2242_v56 = vpop.f32.mrf.mxu0 }
 0xe19   : > { %v2246_v57 = vand.u32 2147483647, %v2242_v56  ;;  %2925 = vmatpush3.msra.mxu1 %v2242_v56 }
 0xe1a   : > { %v2923_v58 = vpop.f32.mrf.mxu0  ;;  %2927 = vmatmul.mubr.msk.f32.vlgmr.msra.gmra.mxu1 %vm408_vm2, %v3412_v54  ;;  %2934 = vmatprep.subr.mxu1 %v3163_v0 }
 0xe1b   : > { %v2247_v59 = vsel %vm408_vm2, %v2246_v57, 0.0  ;;  %2936 = vmatprep.mubr.msk.f32.mxu1 %vm3164_vm0, %v3163_v0 }
 0xe1c   : > { %2248 = vadd.xlane.f32.xlu0 %v2247_v59 }
 0xe1d   : > { %s2969_s16 = spop %2968 }
 0xe1e   : > { %s2971_s29 = spop %2970  ;;  %s2009_s23 = smul.f32 0.015625, %s2969_s16 }
 0xe1f   : > { %s2102_s26 = smul.f32 0.0009765625, %s2971_s29 }
 0xe20   : > { %s2010_s9 = sadd.f32 %s2009_s23, %s1854_s20  ;;  %s3576_s23 = scalar_lea.hbm %s3651_s15, %s2729_s12 }
 0xe22   : > { %s2011_s17 = sadd.f32 %s2010_s9, %s1451_s22 }
 0xea5   : > { %v2249_v60 = vpop.xlane.xlu0 %2248 }
 0xea6   : > { %v2250_v61 = vrot.slane %v2249_v60, 4 }
 0xea8   : > { %v2251_v62 = vadd.f32 %v2250_v61, %v2249_v60 }
 0xeaa   : > { %v2252_v63 = vrot.slane %v2251_v62, 2 }
 0xeac   : > { %v2253_v3 = vadd.f32 %v2252_v63, %v2251_v62 }
 0xeae   : > { %v2254_v4 = vrot.slane %v2253_v3, 1 }
 0xeb0   : > { %v2255_v5 = vadd.f32 %v2254_v4, %v2253_v3 }
 0xeb2   : > { %2972 = vpush %v2255_v5 }
 0xeda   : > { %v2325_v6 = vpop.f32.mrf.mxu1 }
 0xedb   : > { %2932 = vmatmul.mubr.msk.f32.vlgmr.msra.gmra.mxu0 %vm408_vm2, %v2325_v6 }
 0xedc   : > { %v2928_v7 = vpop.f32.mrf.mxu1  ;;  %2940 = vmatpush3.msra.mxu0 %v3376_v2  ;;  %2941 = vmatprep.mubr.msk.f32.mxu0 %vm3164_vm0, %v3163_v0 }
 0xee3   : > { %s2973_s7 = spop %2972 }
 0xee4   : > { %s2257_s13 = smul.f32 0.001953125, %s2973_s7  ;;  %s2589_s7 = sshll.u32 %s257_s5, 4  ;;  %s2590_s7 = int_to_ptr.vmem [resolvable:$true] %s2589_s7 }
 0xee5   : > { %s3089_s30 = scalar_lea.vmem %s2590_s7, 128 }
 0xee6   : > { %s2258_s0 = sadd.f32 %s2257_s13, %s2102_s26  ;;  %p3090_p13 = scmp.ne.s32.totalorder %s2590_s7, %s3089_s30 }
 0xee8   : > { %p3091_p12 = pnand %p3090_p13, %p3653_p1 }
 0xeea   : > { %p3092_p7 = pneg %p3091_p12 }
 0xf9b   : > { %v2398_v8 = vpop.f32.mrf.mxu0 }
 0xf9c   : > { %v2402_v9 = vand.u32 2147483647, %v2398_v8  ;;  %2935 = vmatpush3.msra.mxu1 %v2398_v8 }
 0xf9d   : > { %v2933_v10 = vpop.f32.mrf.mxu0  ;;  %2937 = vmatmul.mubr.msk.f32.vlgmr.msra.gmra.mxu1 %vm408_vm2, %v3412_v54 }
 0xf9e   : > { %v2403_v11 = vsel %vm408_vm2, %v2402_v9, 0.0 }
 0xf9f   : > { %2404 = vadd.xlane.f32.xlu1 %v2403_v11 }
0x1028   : > { %v2405_v12 = vpop.xlane.xlu1 %2404 }
0x1029   : > { %v2406_v13 = vrot.slane %v2405_v12, 4 }
0x102b   : > { %v2407_v14 = vadd.f32 %v2406_v13, %v2405_v12 }
0x102d   : > { %v2408_v15 = vrot.slane %v2407_v14, 2 }
0x102f   : > { %v2409_v16 = vadd.f32 %v2408_v15, %v2407_v14 }
0x1031   : > { %v2410_v17 = vrot.slane %v2409_v16, 1 }
0x1033   : > { %v2411_v2 = vadd.f32 %v2410_v17, %v2409_v16 }
0x1035   : > { %2974 = vpush %v2411_v2 }
0x105d   : > { %v2481_v18 = vpop.f32.mrf.mxu1 }
0x105e   : > { %2942 = vmatmul.mubr.msk.f32.vlgmr.msra.gmra.mxu0 %vm408_vm2, %v2481_v18 }
0x105f   : > { %v2938_v0 = vpop.f32.mrf.mxu1 }
0x1066   : > { %s2975_s11 = spop %2974 }
0x1067   : > { %s2413_s1 = smul.f32 0.00390625, %s2975_s11  ;;  %s2576_s11 = scalar_lea.sflag [#allocation5], %s3347_s10 }
0x1069   : > { %s2414_s24 = sadd.f32 %s2413_s1, %s2258_s0 }
0x111e   : > { %v2554_v19 = vpop.f32.mrf.mxu0 }
0x111f   : > { %v2558_v20 = vand.u32 2147483647, %v2554_v19 }
0x1120   : > { %v2943_v21 = vpop.f32.mrf.mxu0 }
0x1121   : > { %v2559_v54 = vsel %vm408_vm2, %v2558_v20, 0.0 }
0x1122   : > { %2560 = vadd.xlane.f32.xlu0 %v2559_v54 }
0x11ab   : > { %v2561_v22 = vpop.xlane.xlu0 %2560 }
0x11ac   : > { %v2562_v1 = vrot.slane %v2561_v22, 4 }
0x11ae   : > { %v2563_v23 = vadd.f32 %v2562_v1, %v2561_v22 }
0x11b0   : > { %v2564_v24 = vrot.slane %v2563_v23, 2 }
0x11b2   : > { %v2565_v25 = vadd.f32 %v2564_v24, %v2563_v23 }
0x11b4   : > { %v2566_v26 = vrot.slane %v2565_v25, 1 }
0x11b6   : > { %v2567_v27 = vadd.f32 %v2566_v26, %v2565_v25 }
0x11b8   : > { %2976 = vpush %v2567_v27 }
0x11e9   : > { %s2977_s8 = spop %2976 }
0x11ea   : > { %s2569_s4 = smul.f32 0.015625, %s2977_s8 }
0x11ec   : > { %s2570_s16 = sadd.f32 %s2569_s4, %s2414_s24  ;;  %s3165_s4 = smov [#allocation8]  }
0x11ed   : > { %s3093_s19 = sshll.u32 %s3165_s4, 4  ;;  %s3094_s19 = int_to_ptr.vmem [resolvable:$false] %s3093_s19 }
0x11ee   : > { %s2571_s21 = sadd.f32 %s2570_s16, %s2011_s17  ;;  %s3095_s25 = scalar_lea.vmem %s3094_s19, 256 }
0x11ef   : > { %p3096_p10 = scmp.lt.s32.totalorder %s2590_s7, %s3094_s19  ;;  %p3097_p0 = scmp.lt.s32.totalorder %s3095_s25, %s3089_s30 }
0x11f0   : > { %s2572_s28 = sadd.f32 %s2571_s21, %s325_s18 }
0x11f1   : > { %p3098_p2 = por %p3097_p0, %p3096_p10 }
0x11f2   : > { %v2573_v28 = vstv %s2572_s28 }
0x11f3   : > { %2574 = vst [vmem:[%s257_s5] sm:$0xff] %v2573_v28  ;;  %p3099_p4 = pnand %p3098_p2, %p3092_p7 }
0x11f5   : > { %3102 = shalt.err (!%p3099_p4)
}
0x11f6   : > { %s3103_s13 = scalar_lea.hbm %s3576_s23, 128  ;;  %s3107_s26 = scalar_lea.hbm %s3652_s14, 256 }
0x11f7   : > { %p3104_p9 = scmp.ne.s32.totalorder %s3576_s23, %s3103_s13  ;;  %p3108_p5 = scmp.lt.s32.totalorder %s3576_s23, %s3652_s14 }
0x11f8   : > { %p3109_p8 = scmp.lt.s32.totalorder %s3107_s26, %s3103_s13 }
0x11f9   : > { %p3105_p11 = pnand %p3104_p9, %p3653_p1 }
0x11fa   : > { %p3110_p6 = por %p3109_p8, %p3108_p5 }
0x11fb   : > { %p3106_p3 = pneg %p3105_p11 }
0x11fd   : > { %p3111_p13 = pnand %p3110_p6, %p3106_p3 }
0x11ff   : > { %3114 = shalt.err (!%p3111_p13)
}
0x1200   : > { %2982 = dma.vmem_to_hbm [thread:$0]  (%p3653_p1), %s2590_s7, 128, %s3576_s23, %s2576_s11  }
0x1201 PF: > { %s3654_s9 = sld [smem:[#allocation12_spill]] }
0x1202   : > { %s3655_s0 = sld [smem:[#allocation18_spill]] }
0x1203   : > { %s3656_s3 = sld [smem:[#allocation15_spill]] }
0x1207   : > { %s2601_s22 = sand.u32 1, %s3654_s9  }
0x1208   : > { %p3657_p12 = scmp.ne.s32.totalorder %s3655_s0, 0  ;;  %s2602_s8 = scalar_lea.sflag [#allocation5], %s2601_s22 }
0x1209   : > { %p3658_p7 = scmp.ge.s32.totalorder %s3656_s3, 2 }
0x120b   : > { %p2992_p10 = pnand %p3658_p7, %p3657_p12 }
0x120d   : > { %p2993_p0 = pneg %p2992_p10 }
0x120f   : > { %3140 = dma.done.wait (%p2993_p0), %s2602_s8, 128  }
0x1210   : > { %3142 = vsyncadd (%p2993_p0), %s2602_s8, 4294967168  ;;  %s3659_s18 = sld [smem:[#allocation16_spill]] }
0x1211   : > { %s3660_s15 = sld [smem:[#allocation13_spill]] }
0x1212   : > { %s3661_s16 = sld [smem:[#allocation14_spill]] }
0x1213   : > { %s3662_s17 = sld [smem:[#allocation17_spill]] }
0x1216   : > { %p20_p2 = scmp.ge.s32.totalorder %s3659_s18, 4  }
0x1218   :  { %22 = sbr.rel (!%p20_p2) target bundleno = 13 (0xd), region = 101 }
0x121d   :  { %2607 = vsyncpa [#allocation4], 1 }
0x121e   :  { %2609 = vsyncpa [#allocation4 + $0x1], 1 }
0x121f   :  { %2610 = vsyncpa [#allocation7], 1 }
0x1220   :  { %2612 = vsyncpa [#allocation7 + $0x1], 1 }
0x1221   :  { %2613 = vsyncpa [#allocation5], 1 }
0x1222   :  { %2615 = vsyncpa [#allocation5 + $0x1], 1 }

</bundles_post_ra>
